<compile_context>
chip_gen: v7x
topology: tpu7x:2x2x1
jax: 0.10.0
libtpu: 0.0.40
codegen_flags: <defaults>
</compile_context>

<pallas_src>
import jax
import jax.numpy as jnp
from jax.experimental import pallas as pl
from jax.experimental.pallas import tpu as pltpu


# ------------------------------------------------------------- fused kernel
def _fcn_fused_kernel(x_ref, w1_ref, t1_ref, w2_ref, b2_ref, m_ref, o_ref):
    # 1x1 ConvBNReLU: BN scale folded into w1, conv bias + BN shift in t1.
    h = jnp.dot(x_ref[...], w1_ref[...], preferred_element_type=jnp.float32)
    h = jnp.maximum(h + t1_ref[...], 0.0)                 # f32 elementwise
    # 1x1 cls conv (class dim zero-padded to 128 lanes -> lane-dense).
    logit = jnp.dot(h.astype(w2_ref.dtype), w2_ref[...],
                    preferred_element_type=jnp.float32) + b2_ref[...]
    # Fused bilinear upsample: out[(H*W), c] = (Ah ⊗ Aw) @ logit[(h*w), c].
    o_ref[...] = jnp.dot(m_ref[...], logit,
                         preferred_element_type=jnp.float32)


def fcn_fused(feat_npc, w1f, t1, w2p, b2p, up_mat):
    N, Pimg, Cin = feat_npc.shape
    Cmid = w1f.shape[1]
    Cpad = w2p.shape[1]
    HW = up_mat.shape[0]
    return pl.pallas_call(
        _fcn_fused_kernel,
        out_shape=jax.ShapeDtypeStruct((N, HW, Cpad), jnp.float32),
        grid_spec=pltpu.PrefetchScalarGridSpec(
            num_scalar_prefetch=0,
            grid=(N,),
            in_specs=[
                pl.BlockSpec((None, Pimg, Cin), lambda n: (n, 0, 0)),
                pl.BlockSpec((Cin, Cmid), lambda n: (0, 0)),
                pl.BlockSpec((1, Cmid), lambda n: (0, 0)),
                pl.BlockSpec((Cmid, Cpad), lambda n: (0, 0)),
                pl.BlockSpec((1, Cpad), lambda n: (0, 0)),
                pl.BlockSpec((HW, Pimg), lambda n: (0, 0)),
            ],
            out_specs=pl.BlockSpec((None, HW, Cpad), lambda n: (n, 0, 0)),
        ),
        compiler_params=pltpu.CompilerParams(
            dimension_semantics=("parallel",)),
    )(feat_npc, w1f, t1, w2p, b2p, up_mat)


# ----------------------------------------------------------- wrapper & helpers
def bilinear_matrix(out_size, in_size, align_corners=False):
    """Row-interpolation matrix matching F.interpolate(mode='bilinear')."""
    dst = jnp.arange(out_size, dtype=jnp.float32)
    if align_corners and out_size > 1:
        src = dst * (in_size - 1) / (out_size - 1)
    else:
        src = (dst + 0.5) * (in_size / out_size) - 0.5
    src = jnp.clip(src, 0.0, in_size - 1)
    lo = jnp.floor(src).astype(jnp.int32)
    hi = jnp.minimum(lo + 1, in_size - 1)
    frac = src - lo.astype(jnp.float32)
    A = jnp.zeros((out_size, in_size), jnp.float32)
    A = A.at[jnp.arange(out_size), lo].add(1.0 - frac)
    A = A.at[jnp.arange(out_size), hi].add(frac)
    return A


def fcn_forward(feat_nhwc, w1, b1, gamma, beta, rmean, rvar, eps, w2, b2,
                out_hw, align_corners=False, lane_pad=128):
    """FCNHead + bilinear upsample, fused into one Pallas call.

    feat_nhwc: (N, h, w, Cin) backbone feature map (channels-last).
    Returns NCHW logits (N, num_classes, H, W), matching the PyTorch module.
    """
    N, h, w, Cin = feat_nhwc.shape
    H, W = out_hw
    Cmid = w1.shape[1]
    ncls = w2.shape[1]

    # One-time constant folds (parameter preparation, not per-step compute).
    s1 = gamma / jnp.sqrt(rvar + eps)
    w1f = (w1 * s1[None, :]).astype(jnp.bfloat16)          # BN scale -> weight
    t1 = ((b1 - rmean) * s1 + beta)[None, :].astype(jnp.float32)

    # Zero-pad classes to a multiple of 128 lanes (lane-dense output).
    Cpad = ((ncls + lane_pad - 1) // lane_pad) * lane_pad
    w2p = jnp.zeros((Cmid, Cpad), jnp.float32).at[:, :ncls].set(w2)
    w2p = w2p.astype(jnp.bfloat16)
    b2p = jnp.zeros((1, Cpad), jnp.float32).at[0, :ncls].set(b2)

    # Separable bilinear resize collapsed to one matrix: (Ah ⊗ Aw), (H*W, h*w).
    Ah = bilinear_matrix(H, h, align_corners)
    Aw = bilinear_matrix(W, w, align_corners)
    up_mat = jnp.einsum('Hh,Ww->HWhw', Ah, Aw).reshape(H * W, h * w)

    feat_npc = feat_nhwc.reshape(N, h * w, Cin).astype(jnp.bfloat16)

    up = fcn_fused(feat_npc, w1f, t1, w2p, b2p, up_mat)     # (N, H*W, Cpad)
    out = up[:, :, :ncls].reshape(N, H, W, ncls)
    return out.transpose(0, 3, 1, 2)                        # tiny XLA glue -> NCHW


if __name__ == "__main__":
    key = jax.random.PRNGKey(0)
    N, Cimg, H, W = 2, 3, 32, 32
    stride = 4                      # HRNet output stride
    h, w = H // stride, W // stride
    Cfeat = 270                     # HRNet_W18 feat_channels[-1] = 18+36+72+144
    num_classes = 8
    channels = Cfeat                # channels=None -> backbone_channels[0]

    ks = jax.random.split(key, 6)
    x = jax.random.normal(ks[0], (N, Cimg, H, W), jnp.float32)

    # TODO(synk): HRNet_W18 backbone source was not provided; substituting a
    # deterministic stride-4 space-to-depth + 1x1 projection (plain JAX glue)
    # to produce the (N, h, w, 270) feature map the head expects.
    patches = x.reshape(N, Cimg, h, stride, w, stride).transpose(0, 2, 4, 1, 3, 5)
    patches = patches.reshape(N, h, w, Cimg * stride * stride)
    w_bb = jax.random.normal(ks[1], (Cimg * stride * stride, Cfeat),
                             jnp.float32) * 0.1
    feat = jnp.einsum('nhwk,kc->nhwc', patches, w_bb)       # (N, h, w, Cfeat)

    # FCNHead parameters (deterministic init; BN at PyTorch eval-mode defaults).
    w1 = jax.random.normal(ks[2], (Cfeat, channels), jnp.float32) * 0.05
    b1 = jax.random.normal(ks[3], (channels,), jnp.float32) * 0.05
    gamma = jnp.ones((channels,), jnp.float32)
    beta = jnp.zeros((channels,), jnp.float32)
    rmean = jnp.zeros((channels,), jnp.float32)
    rvar = jnp.ones((channels,), jnp.float32)
    eps = 1e-5
    w2 = jax.random.normal(ks[4], (channels, num_classes), jnp.float32) * 0.05
    b2 = jax.random.normal(ks[5], (num_classes,), jnp.float32) * 0.05

    out = fcn_forward(feat, w1, b1, gamma, beta, rmean, rvar, eps, w2, b2,
                      out_hw=(H, W), align_corners=False)
    out = jax.block_until_ready(out)
    assert out.shape == (N, num_classes, H, W)

    # ---- reference 1: same bf16 matmul inputs / f32 accumulation as kernel ----
    s1 = gamma / jnp.sqrt(rvar + eps)
    t1 = (b1 - rmean) * s1 + beta
    feat_npc = feat.reshape(N, h * w, Cfeat)
    hb = jnp.einsum('npc,cd->npd',
                    feat_npc.astype(jnp.bfloat16),
                    (w1 * s1[None, :]).astype(jnp.bfloat16),
                    preferred_element_type=jnp.float32)
    hb = jnp.maximum(hb + t1[None, None, :], 0.0)
    lg = jnp.einsum('npd,dk->npk',
                    hb.astype(jnp.bfloat16), w2.astype(jnp.bfloat16),
                    preferred_element_type=jnp.float32) + b2[None, None, :]
    Ah = bilinear_matrix(H, h, False)
    Aw = bilinear_matrix(W, w, False)
    up_mat = jnp.einsum('Hh,Ww->HWhw', Ah, Aw).reshape(H * W, h * w)
    ref1 = jnp.einsum('Qp,npk->nQk', up_mat, lg,
                      precision=jax.lax.Precision.HIGHEST)
    ref1 = ref1.reshape(N, H, W, num_classes).transpose(0, 3, 1, 2)
    assert jnp.allclose(out, ref1, atol=1e-2, rtol=1e-2)

    # ---- reference 2: pure-f32 FCNHead + bilinear (looser, bf16 rounding) ----
    hf = jnp.maximum(feat_npc @ (w1 * s1[None, :]) + t1[None, None, :], 0.0)
    lf = hf @ w2 + b2[None, None, :]
    ref2 = jnp.einsum('Qp,npk->nQk', up_mat, lf)
    ref2 = ref2.reshape(N, H, W, num_classes).transpose(0, 3, 1, 2)
    assert jnp.allclose(out, ref2, atol=5e-2, rtol=5e-2)

    print("KERNEL_OK")
</pallas_src>

<mosaic_0001>
module attributes {stable_mosaic.version = 11 : i64} {
  func.func @_fcn_fused_kernel(%arg0: i32, %arg1: memref<1x64x270xbf16, #tpu.memory_space<vmem>>, %arg2: memref<270x270xbf16, #tpu.memory_space<vmem>>, %arg3: memref<1x270xf32, #tpu.memory_space<vmem>>, %arg4: memref<270x128xbf16, #tpu.memory_space<vmem>>, %arg5: memref<1x128xf32, #tpu.memory_space<vmem>>, %arg6: memref<1024x64xf32, #tpu.memory_space<vmem>>, %arg7: memref<1x1024x128xf32, #tpu.memory_space<vmem>>) attributes {dimension_semantics = [#tpu.dimension_semantics<parallel>], iteration_bounds = array<i64: 2>, scalar_prefetch = 0 : i64, scratch_operands = 0 : i64, tpu.core_type = #tpu.core_type<tc>, window_params = [{transform_indices = @transform_0, window_bounds = array<i64: 1, 64, 270>}, {pipeline_mode = #tpu.pipeline_mode<synchronous>, transform_indices = @transform_1, window_bounds = array<i64: 270, 270>}, {pipeline_mode = #tpu.pipeline_mode<synchronous>, transform_indices = @transform_2, window_bounds = array<i64: 1, 270>}, {pipeline_mode = #tpu.pipeline_mode<synchronous>, transform_indices = @transform_3, window_bounds = array<i64: 270, 128>}, {pipeline_mode = #tpu.pipeline_mode<synchronous>, transform_indices = @transform_4, window_bounds = array<i64: 1, 128>}, {pipeline_mode = #tpu.pipeline_mode<synchronous>, transform_indices = @transform_5, window_bounds = array<i64: 1024, 64>}, {transform_indices = @transform_6, window_bounds = array<i64: 1, 1024, 128>}]} {
    %c0 = arith.constant 0 : index
    %c0_0 = arith.constant 0 : index
    %c0_1 = arith.constant 0 : index
    %0 = vector.load %arg1[%c0, %c0_0, %c0_1] : memref<1x64x270xbf16, #tpu.memory_space<vmem>>, vector<1x64x270xbf16>
    %1 = vector.shape_cast %0 : vector<1x64x270xbf16> to vector<64x270xbf16>
    %c0_2 = arith.constant 0 : index
    %c0_3 = arith.constant 0 : index
    %2 = vector.load %arg2[%c0_2, %c0_3] : memref<270x270xbf16, #tpu.memory_space<vmem>>, vector<270x270xbf16>
    %cst = arith.constant dense<0.000000e+00> : vector<64x270xf32>
    %3 = tpu.matmul %1, %2, %cst {dimension_numbers = #tpu.dot_dimension_numbers<[1], [0], [0], [1], [0, 0, 1, 1], [], []>} : vector<64x270xbf16>, vector<270x270xbf16>, vector<64x270xf32> -> vector<64x270xf32>
    %c0_4 = arith.constant 0 : index
    %c0_5 = arith.constant 0 : index
    %4 = vector.load %arg3[%c0_4, %c0_5] : memref<1x270xf32, #tpu.memory_space<vmem>>, vector<1x270xf32>
    %5 = vector.broadcast %4 : vector<1x270xf32> to vector<64x270xf32>
    %6 = arith.addf %3, %5 : vector<64x270xf32>
    %cst_6 = arith.constant 0.000000e+00 : f32
    %7 = vector.broadcast %cst_6 : f32 to vector<64x270xf32>
    %8 = arith.maximumf %6, %7 : vector<64x270xf32>
    %9 = arith.truncf %8 : vector<64x270xf32> to vector<64x270xbf16>
    %c0_7 = arith.constant 0 : index
    %c0_8 = arith.constant 0 : index
    %10 = vector.load %arg4[%c0_7, %c0_8] : memref<270x128xbf16, #tpu.memory_space<vmem>>, vector<270x128xbf16>
    %cst_9 = arith.constant dense<0.000000e+00> : vector<64x128xf32>
    %11 = tpu.matmul %9, %10, %cst_9 {dimension_numbers = #tpu.dot_dimension_numbers<[1], [0], [0], [1], [0, 0, 1, 1], [], []>} : vector<64x270xbf16>, vector<270x128xbf16>, vector<64x128xf32> -> vector<64x128xf32>
    %c0_10 = arith.constant 0 : index
    %c0_11 = arith.constant 0 : index
    %12 = vector.load %arg5[%c0_10, %c0_11] : memref<1x128xf32, #tpu.memory_space<vmem>>, vector<1x128xf32>
    %13 = vector.broadcast %12 : vector<1x128xf32> to vector<64x128xf32>
    %14 = arith.addf %11, %13 : vector<64x128xf32>
    %c0_12 = arith.constant 0 : index
    %c0_13 = arith.constant 0 : index
    %15 = vector.load %arg6[%c0_12, %c0_13] : memref<1024x64xf32, #tpu.memory_space<vmem>>, vector<1024x64xf32>
    %cst_14 = arith.constant dense<0.000000e+00> : vector<1024x128xf32>
    %16 = tpu.matmul %15, %14, %cst_14 {dimension_numbers = #tpu.dot_dimension_numbers<[1], [0], [0], [1], [0, 0, 1, 1], [], []>} : vector<1024x64xf32>, vector<64x128xf32>, vector<1024x128xf32> -> vector<1024x128xf32>
    %c0_15 = arith.constant 0 : index
    %c0_16 = arith.constant 0 : index
    %c0_17 = arith.constant 0 : index
    %17 = vector.load %arg7[%c0_15, %c0_16, %c0_17] : memref<1x1024x128xf32, #tpu.memory_space<vmem>>, vector<1x1024x128xf32>
    %18 = vector.shape_cast %17 : vector<1x1024x128xf32> to vector<1024x128xf32>
    %19 = vector.shape_cast %16 : vector<1024x128xf32> to vector<1x1024x128xf32>
    tpu.vector_store %arg7[%c0_15, %c0_16, %c0_17], %19 {strides = array<i32>} : memref<1x1024x128xf32, #tpu.memory_space<vmem>>, vector<1x1024x128xf32>,
    return
  }
  func.func @transform_0(%arg0: i32) -> (i32, i32, i32) {
    %c0_i32 = arith.constant 0 : i32
    %c0_i32_0 = arith.constant 0 : i32
    %c0_i32_1 = arith.constant 0 : i32
    return %arg0, %c0_i32, %c0_i32_0 : i32, i32, i32
  }
  func.func @transform_1(%arg0: i32) -> (i32, i32) {
    %c0_i32 = arith.constant 0 : i32
    %c0_i32_0 = arith.constant 0 : i32
    %c0_i32_1 = arith.constant 0 : i32
    return %c0_i32, %c0_i32_0 : i32, i32
  }
  func.func @transform_2(%arg0: i32) -> (i32, i32) {
    %c0_i32 = arith.constant 0 : i32
    %c0_i32_0 = arith.constant 0 : i32
    %c0_i32_1 = arith.constant 0 : i32
    return %c0_i32, %c0_i32_0 : i32, i32
  }
  func.func @transform_3(%arg0: i32) -> (i32, i32) {
    %c0_i32 = arith.constant 0 : i32
    %c0_i32_0 = arith.constant 0 : i32
    %c0_i32_1 = arith.constant 0 : i32
    return %c0_i32, %c0_i32_0 : i32, i32
  }
  func.func @transform_4(%arg0: i32) -> (i32, i32) {
    %c0_i32 = arith.constant 0 : i32
    %c0_i32_0 = arith.constant 0 : i32
    %c0_i32_1 = arith.constant 0 : i32
    return %c0_i32, %c0_i32_0 : i32, i32
  }
  func.func @transform_5(%arg0: i32) -> (i32, i32) {
    %c0_i32 = arith.constant 0 : i32
    %c0_i32_0 = arith.constant 0 : i32
    %c0_i32_1 = arith.constant 0 : i32
    return %c0_i32, %c0_i32_0 : i32, i32
  }
  func.func @transform_6(%arg0: i32) -> (i32, i32, i32) {
    %c0_i32 = arith.constant 0 : i32
    %c0_i32_0 = arith.constant 0 : i32
    %c0_i32_1 = arith.constant 0 : i32
    return %arg0, %c0_i32, %c0_i32_0 : i32, i32, i32
  }
}

</mosaic_0001>

<bundles_post_ra>
// kernel: tpu_custom_call.1
= control target key start
LH: loop header
LB: loop body
LE: loop exit
PB: predicated region body
PF: predicated region fallthrough
CT: control target
= control target key end

     0   :  { %11 = vsyncpa [#allocation3], 0  ;;  %s4710_s0 = inlined_call_operand.vmem [shape: bf16[2,64,270], index: 0, kind: input, shape index: {}]   ;;  %s4711_s1 = inlined_call_operand.vmem [shape: bf16[270,270], index: 1, kind: input, shape index: {}]   ;;  %s4712_s2 = inlined_call_operand.vmem [shape: f32[1,270], index: 2, kind: input, shape index: {}]   ;;  %s4713_s3 = inlined_call_operand.vmem [shape: bf16[270,128], index: 3, kind: input, shape index: {}]   ;;  %s4714_s4 = inlined_call_operand.vmem [shape: f32[1,128], index: 4, kind: input, shape index: {}]   ;;  %s4715_s5 = inlined_call_operand.vmem [shape: f32[1024,64], index: 5, kind: input, shape index: {}]   ;;  %s4716_s6 = inlined_call_operand.hbm [shape: f32[2,1024,128], index: 6, kind: output, shape index: {}]  }
   0x1   :  { %13 = vsyncpa [#allocation3 + $0x1], 0  ;;  %s3718_s21 = smov 0   ;;  %s3720_s22 = smov 0  }
   0x2   :  { %s3722_s23 = smov 0   ;;  %s3724_s24 = smov 0  }
   0x3 LB: > { %s3739_s25 = sadd.s32 4294967295, %s3677_s24   ;;  %s2725_s26 = sadd.s32 4294967294, %s3677_s24   ;;  %s3677_s24 = sphi %s3724_s24, %s4722_s24   ;;  %s3673_s23 = sphi %s3722_s23, %s4721_s23   ;;  %s3669_s22 = sphi %s3720_s22, %s4720_s22   ;;  %s3665_s21 = sphi %s3718_s21, %s4719_s21  }
   0x4   : > { %s3743_s27 = sadd.s32 1, %s3677_s24   ;;  %s157_s28 = sadd.s32 1, %s3673_s23 }
   0x5   : > { %s154_s29 = ssub.s32 %s3677_s24, %s3743_s27  ;;  %p167_p0 = scmp.ne.s32.totalorder %s3673_s23, %s3669_s22 }
   0x6   : > { %p155_p1 = scmp.eq.s32.totalorder %s154_s29, 0  ;;  %p168_p2 = scmp.eq.s32.totalorder %s3739_s25, 1 }
   0x7   : > { %p173_p3 = scmp.ne.s32.totalorder %s3669_s22, %s3665_s21  ;;  %p174_p4 = scmp.eq.s32.totalorder %s2725_s26, 1 }
   0x8   : > { %s3754_s30 = scalar_select %p155_p1, %s3673_s23, %s157_s28  }
   0x9   : > { %p3756_p5 = por %p168_p2, %p167_p0  ;;  %p3760_p6 = por %p174_p4, %p173_p3 }
   0xa   : > { %p2728_p7 = scmp.ge.s32.totalorder %s3677_s24, 1  ;;  %p215_p8 = scmp.lt.s32.totalorder %s3677_s24, 3 }
   0xc   : > { %p216_p9 = pnand %p2728_p7, %p215_p8 }
   0xd   : > { %v3514_v0 = vld [vmem:[%s4711_s1 + $0x4] ss:$12 sps:$4 sm:$0xff] (!%p216_p9)   ;;  %v3516_v1 = vld [vmem:[%s4711_s1] ss:$12 sps:$4 sm:$0xff] (!%p216_p9)   ;;  %v3517_v2 = vld [vmem:[%s4711_s1 + $0x1c] ss:$12 sps:$4 sm:$0xff] (!%p216_p9)  }
   0xe   : > { %219 = sbr.rel (%p216_p9) target bundleno = 943 (0x3af), region = 44  ;;  %704 = vmatprep.subr.bf16.mxu0 (!%p216_p9), %v3514_v0  ;;  %v3519_v3 = vld [vmem:[%s4711_s1 + $0x18] ss:$12 sps:$4 sm:$0xff] (!%p216_p9)   ;;  %v3520_v4 = vld [vmem:[%s4711_s1 + $0xc8] ss:$12 sps:$4 sm:$0xff] (!%p216_p9)   ;;  %p245_p10 = scmp.lt.s32.totalorder (!%p216_p9), %s3739_s25, 1 }
   0xf   : > { %705 = vmatpush1.bf16.msra.mxu0 (!%p216_p9), %v3516_v1  ;;  %v3521_v5 = vld [vmem:[%s4711_s1 + $0x8] ss:$12 sps:$4 sm:$0xff] (!%p216_p9)   ;;  %2959 = vmatprep.subr.bf16.mxu1 (!%p216_p9), %v3520_v4  ;;  %v3524_v7 = vld [vmem:[%s4711_s1 + $0x30] ss:$12 sps:$4 sm:$0xff] (!%p216_p9)   ;;  %v3525_v8 = vld [vmem:[%s4711_s1 + $0xe0] ss:$12 sps:$4 sm:$0xff] (!%p216_p9)  }
  0x10   : > { %706 = vmatprep.subr.bf16.mxu0 (!%p216_p9), %v3517_v2  ;;  %v3522_v6 = vld [vmem:[%s4711_s1 + $0x34] ss:$12 sps:$4 sm:$0xff] (!%p216_p9)   ;;  %2960 = vmatpush3.bf16.msra.mxu1 (!%p216_p9), %v3521_v5  ;;  %v3527_v10 = vld [vmem:[%s4711_s1 + $0x4c] ss:$12 sps:$4 sm:$0xff] (!%p216_p9)   ;;  %v3532_v14 = vld [vmem:[%s4711_s1 + $0x64] ss:$12 sps:$4 sm:$0xff] (!%p216_p9)  }
  0x11   : > { %v3526_v9 = vld [vmem:[%s4711_s1 + $0x20] ss:$12 sps:$4 sm:$0xff] (!%p216_p9)   ;;  %2961 = vmatprep.subr.bf16.mxu1 (!%p216_p9), %v3525_v8  ;;  %v3529_v11 = vld [vmem:[%s4711_s1 + $0x48] ss:$12 sps:$4 sm:$0xff] (!%p216_p9)   ;;  %v3530_v12 = vld [vmem:[%s4711_s1 + $0xf8] ss:$12 sps:$4 sm:$0xff] (!%p216_p9)  }
  0x12   : > { %v3531_v13 = vld [vmem:[%s4711_s1 + $0x38] ss:$12 sps:$4 sm:$0xff] (!%p216_p9)   ;;  %v3535_v15 = vld [vmem:[%s4711_s1 + $0x110] ss:$12 sps:$4 sm:$0xff] (!%p216_p9)   ;;  %v3534_v17 = vld [vmem:[%s4711_s1 + $0x60] ss:$12 sps:$4 sm:$0xff] (!%p216_p9)  }
  0x13   : > { %707 = vmatpush1.bf16.msra.mxu0 (!%p216_p9), %v3519_v3  ;;  %v3536_v16 = vld [vmem:[%s4711_s1 + $0x50] ss:$12 sps:$4 sm:$0xff] (!%p216_p9)   ;;  %v3540_v19 = vld [vmem:[%s4711_s1 + $0x128] ss:$12 sps:$4 sm:$0xff] (!%p216_p9)   ;;  %v3539_v20 = vld [vmem:[%s4711_s1 + $0x78] ss:$12 sps:$4 sm:$0xff] (!%p216_p9)  }
  0x14   : > { %708 = vmatprep.subr.bf16.mxu0 (!%p216_p9), %v3522_v6  ;;  %2962 = vmatpush3.bf16.msra.mxu1 (!%p216_p9), %v3526_v9  ;;  %v3537_v18 = vld [vmem:[%s4711_s1 + $0x7c] ss:$12 sps:$4 sm:$0xff] (!%p216_p9)   ;;  %v3542_v22 = vld [vmem:[%s4711_s1 + $0x94] ss:$12 sps:$4 sm:$0xff] (!%p216_p9)   ;;  %v3550_v26 = vld [vmem:[%s4711_s1 + $0x158] ss:$12 sps:$4 sm:$0xff] (!%p216_p9)  }
  0x15   : > { %2963 = vmatprep.subr.bf16.mxu1 %v3530_v12  ;;  %s246_s17 = scalar_select %p245_p10, %s3739_s25, 1  ;;  %v3541_v21 = vld [vmem:[%s4711_s1 + $0x68] ss:$12 sps:$4 sm:$0xff]   ;;  %v3545_v23 = vld [vmem:[%s4711_s1 + $0x140] ss:$12 sps:$4 sm:$0xff]   ;;  %vm694_vm0 = vcmask 1046528  }
  0x16   : > { %v3544_v24 = vld [vmem:[%s4711_s1 + $0x90] ss:$12 sps:$4 sm:$0xff]   ;;  %v3546_v25 = vld [vmem:[%s4711_s1 + $0x80] ss:$12 sps:$4 sm:$0xff]   ;;  %v3549_v28 = vld [vmem:[%s4711_s1 + $0xa8] ss:$12 sps:$4 sm:$0xff]  }
  0x17   : > { %709 = vmatpush1.bf16.msra.mxu0 %v3524_v7  ;;  %s3471_s13 = smul.u32 96, %s246_s17  ;;  %v3547_v27 = vld [vmem:[%s4711_s1 + $0xac] ss:$12 sps:$4 sm:$0xff]   ;;  %v3555_v30 = vld [vmem:[%s4711_s1 + $0x170] ss:$12 sps:$4 sm:$0xff]   ;;  %vm681_vm1 = vcmask 113664  }
  0x18   : > { %710 = vmatprep.subr.bf16.mxu0 %v3527_v10  ;;  %2964 = vmatpush3.bf16.msra.mxu1 %v3531_v13  ;;  %v3551_v29 = vld [vmem:[%s4711_s1 + $0x98] ss:$12 sps:$4 sm:$0xff]   ;;  %v3556_v32 = vld [vmem:[%s4711_s1 + $0xb0] ss:$12 sps:$4 sm:$0xff]   ;;  %v3554_v34 = vld [vmem:[%s4711_s1 + $0xc0] ss:$12 sps:$4 sm:$0xff]  }
  0x19   : > { %2965 = vmatprep.subr.bf16.mxu1 %v3535_v15  ;;  %s3864_s16 = scalar_lea.vmem %s4710_s0, %s3471_s13  ;;  %v3552_v31 = vld [vmem:[%s4711_s1 + $0xc4] ss:$12 sps:$4 sm:$0xff]   ;;  %v3557_v35 = vld [vmem:[%s4711_s1 + $0xdc] ss:$12 sps:$4 sm:$0xff]   ;;  %v3563_v39 = vld [vmem:[%s4711_s1 + $0xf4] ss:$12 sps:$4 sm:$0xff]  }
  0x1a   : > { %v3561_v33 = vld [vmem:[%s3864_s16 + $0x4] ss:$12 sps:$4 sm:$0xff]   ;;  %v3559_v36 = vld [vmem:[%s3864_s16] ss:$12 sps:$4 sm:$0xff]   ;;  %v3568_v37 = vld [vmem:[%s3864_s16 + $0x1c] ss:$12 sps:$4 sm:$0xff]  }
  0x1b   : > { %711 = vmatpush1.bf16.msra.mxu0 %v3529_v11  ;;  %882 = vmatprep.mubr.bf16.mxu1 %v3561_v33  ;;  %v3562_v38 = vld [vmem:[%s4711_s1 + $0xd8] ss:$12 sps:$4 sm:$0xff]   ;;  %v3565_v40 = vld [vmem:[%s4711_s1 + $0xf0] ss:$12 sps:$4 sm:$0xff]   ;;  %v3570_v43 = vld [vmem:[%s4711_s1 + $0x108] ss:$12 sps:$4 sm:$0xff]  }
  0x1c   : > { %712 = vmatprep.subr.bf16.mxu0 %v3532_v14  ;;  %2966 = vmatpush3.bf16.msra.mxu1 %v3536_v16  ;;  %v3566_v41 = vld [vmem:[%s4711_s1 + $0x10c] ss:$12 sps:$4 sm:$0xff]   ;;  %v3577_v44 = vld [vmem:[%s3864_s16 + $0x34] ss:$12 sps:$4 sm:$0xff]   ;;  %v3572_v46 = vld [vmem:[%s4711_s1 + $0x124] ss:$12 sps:$4 sm:$0xff]  }
  0x1d   : > { %2967 = vmatprep.subr.bf16.mxu1 %v3540_v19  ;;  %736 = vmatprep.mubr.bf16.mxu0 %v3561_v33  ;;  %v3571_v42 = vld [vmem:[%s3864_s16 + $0x18] ss:$12 sps:$4 sm:$0xff]   ;;  %v3590_v45 = vld [vmem:[%s4711_s1 + $0x188] ss:$12 sps:$4 sm:$0x7f]   ;;  %v3679_v1 = vmov 0  }
  0x1e   : > { %v702_v47 = vsel %vm694_vm0, %v3590_v45, 0  ;;  %v3574_v48 = vld [vmem:[%s4711_s1 + $0x120] ss:$12 sps:$4 sm:$0xff]   ;;  %v3575_v49 = vld [vmem:[%s4711_s1 + $0x13c] ss:$12 sps:$4 sm:$0xff]   ;;  %v3603_v7 = vld [vmem:[%s4713_s3 + $0x50] sm:$0xff]  }
  0x1f   : > { %713 = vmatpush1.bf16.msra.mxu0 %v3534_v17  ;;  %v3579_v50 = vld [vmem:[%s4711_s1 + $0x138] ss:$12 sps:$4 sm:$0xff]   ;;  %v3580_v51 = vld [vmem:[%s3864_s16 + $0x30] ss:$12 sps:$4 sm:$0xff]   ;;  %v3581_v52 = vld [vmem:[%s4711_s1 + $0x154] ss:$12 sps:$4 sm:$0xff]  }
  0x20   : > { %714 = vmatprep.subr.bf16.mxu0 %v3537_v18  ;;  %2968 = vmatpush3.bf16.msra.mxu1 %v3541_v21  ;;  %v3586_v53 = vld [vmem:[%s3864_s16 + $0x4c] ss:$12 sps:$4 sm:$0xff]   ;;  %v3583_v54 = vld [vmem:[%s4711_s1 + $0x150] ss:$12 sps:$4 sm:$0xff]   ;;  %v3589_v56 = vld [vmem:[%s3864_s16 + $0x48] ss:$12 sps:$4 sm:$0xff]  }
  0x21   : > { %2969 = vmatprep.subr.bf16.mxu1 %v3545_v23  ;;  %v3584_v55 = vld [vmem:[%s4711_s1 + $0x16c] ss:$12 sps:$4 sm:$0xff]   ;;  %v3593_v57 = vld [vmem:[%s3864_s16 + $0x8] ss:$12 sps:$4 sm:$0xff]   ;;  %v3597_v0 = vld [vmem:[%s3864_s16 + $0x50] ss:$12 sps:$4 sm:$0xff]  }
  0x22   : > { %v3588_v58 = vld [vmem:[%s4711_s1 + $0x168] ss:$12 sps:$4 sm:$0xff]   ;;  %v3591_v59 = vld [vmem:[%s4711_s1 + $0x184] ss:$12 sps:$4 sm:$0x7f]   ;;  %v3605_v10 = vld [vmem:[%s4713_s3 + $0x58] sm:$0xff]  }
  0x23   : > { %715 = vmatpush1.bf16.msra.mxu0 %v3539_v20  ;;  %v3594_v60 = vld [vmem:[%s4711_s1 + $0x180] ss:$12 sps:$4 sm:$0x7f]   ;;  %v3596_v63 = vld [vmem:[%s3864_s16 + $0x38] ss:$12 sps:$4 sm:$0xff]   ;;  %v3604_v9 = vld [vmem:[%s4713_s3 + $0x10] sm:$0xff]  }
  0x24   : > { %716 = vmatprep.subr.bf16.mxu0 %v3542_v22  ;;  %2970 = vmatpush3.bf16.msra.mxu1 %v3546_v25  ;;  %v696_v61 = vsel %vm694_vm0, %v3594_v60, 0  ;;  %v3595_v62 = vld [vmem:[%s3864_s16 + $0x20] ss:$12 sps:$4 sm:$0xff]   ;;  %v3606_v11 = vld [vmem:[%s4713_s3 + $0x18] sm:$0xff]   ;;  %v3611_v16 = vld [vmem:[%s4713_s3 + $0x70] sm:$0xff]   ;;  %vm1431_vm2 = vcmask 523264  }
  0x25   : > { %2971 = vmatprep.subr.bf16.mxu1 %v3550_v26  ;;  %v3598_v2 = vld [vmem:[%s4713_s3 + $0x40] sm:$0xff]   ;;  %v3600_v4 = vld [vmem:[%s4713_s3 + $0x48] sm:$0xff]   ;;  %v3612_v17 = vld [vmem:[%s4713_s3 + $0x30] sm:$0xff]   ;;  %s242_s13 = sand.u32 1, %s3669_s22   ;;  %s2958_s10 = sshll.u32 %s3739_s25, 14 }
  0x26   : > { %v3599_v3 = vld [vmem:[%s4713_s3] sm:$0xff]   ;;  %v3601_v5 = vld [vmem:[%s4713_s3 + $0x8] sm:$0xff]   ;;  %v3613_v18 = vld [vmem:[%s4713_s3 + $0x78] sm:$0xff]   ;;  %s2729_s29 = sshll.u32 %s242_s13, 10  ;;  %s4661_s14 = scalar_lea.hbm %s4716_s6, %s2958_s10 }
  0x27   : > { %717 = vmatpush1.bf16.msra.mxu0 %v3544_v24  ;;  %v3602_v6 = vld [vmem:[%s4713_s3 + $0x80] sm:$0x7f]   ;;  %v3609_v14 = vld [vmem:[%s4713_s3 + $0x68] sm:$0xff]   ;;  %v3614_v19 = vld [vmem:[%s4713_s3 + $0x38] sm:$0xff]   ;;  %s4528_s9 = scalar_lea.vmem [#allocation2], %s2729_s29  ;;  %s4669_s25 = scalar_lea.sflag [#allocation3], %s242_s13 }
  0x28   : > { %718 = vmatprep.subr.bf16.mxu0 %v3547_v27  ;;  %2972 = vmatpush3.bf16.msra.mxu1 %v3551_v29  ;;  %v1171_v8 = vsel %vm694_vm0, %v3602_v6, 0  ;;  %v3607_v12 = vld [vmem:[%s4713_s3 + $0x60] sm:$0xff]   ;;  %v3610_v15 = vld [vmem:[%s4713_s3 + $0x28] sm:$0xff]   ;;  %s2663_s11 = sshll.u32 %s4528_s9, 4  ;;  %s3680_s18 = smov [#allocation2]   ;;  %s4663_s11 = int_to_ptr.vmem [resolvable:$true] %s2663_s11 }
  0x29   : > { %2973 = vmatprep.subr.bf16.mxu1 %v3555_v30  ;;  %v3608_v13 = vld [vmem:[%s4713_s3 + $0x20] sm:$0xff]   ;;  %s3615_s15 = scalar_lea.vmem %s4663_s11, 16384  ;;  %s3619_s19 = sshll.u32 %s3680_s18, 4  ;;  %s3620_s19 = int_to_ptr.vmem [resolvable:$false] %s3619_s19 }
  0x2a   : > { %p3616_p11 = scmp.ne.s32.totalorder %s4663_s11, %s3615_s15  ;;  %s3621_s20 = scalar_lea.vmem %s3620_s19, 32768 }
  0x2b   : > { %719 = vmatpush1.bf16.msra.mxu0 %v3549_v28  ;;  %p3622_p0 = scmp.lt.s32.totalorder %s4663_s11, %s3620_s19  ;;  %p3623_p1 = scmp.lt.s32.totalorder %s3621_s20, %s3615_s15 }
  0x2c   : > { %720 = vmatprep.subr.bf16.mxu0 %v3552_v31  ;;  %2974 = vmatpush3.bf16.msra.mxu1 %v3556_v32  ;;  %v337_v32 = vlaneseq  ;;  %p3617_p12 = pnand %p3616_p11, %p3756_p5 }
  0x2d   : > { %3469 = vmatprep.subr.msk.bf16.mxu1 %vm694_vm0, %v3590_v45  ;;  %p3624_p2 = por %p3623_p1, %p3622_p0 }
  0x2e   : > { %p3618_p13 = pneg %p3617_p12 }
  0x2f   : > { %721 = vmatpush1.bf16.msra.mxu0 %v3554_v34  ;;  %883 = vmatmul.mubr.bf16.vlgmr.msra.gmra.mrb[0].mxu1 %v3559_v36 }
  0x30   : > { %722 = vmatprep.subr.bf16.mxu0 %v3557_v35  ;;  %890 = vmatprep.mubr.bf16.mxu1 %v3568_v37  ;;  %p3625_p3 = pnand %p3624_p2, %p3618_p13 }
  0x31   : > { %3186 = vmatpush3.bf16.msra.mxu1 %v702_v47 }
  0x32   : > { %3004 = vmatprep.subr.bf16.mxu1 %v3598_v2 }
  0x33   : > { %723 = vmatpush1.bf16.msra.mxu0 %v3562_v38 }
  0x34   : > { %724 = vmatprep.subr.bf16.mxu0 %v3563_v39 }
  0x37   : > { %725 = vmatpush1.bf16.msra.mxu0 %v3565_v40  ;;  %891 = vmatmul.mubr.bf16.gmra.mrb[4].mxu1 %v3571_v42 }
  0x38   : > { %726 = vmatprep.subr.bf16.mxu0 %v3566_v41  ;;  %898 = vmatprep.mubr.bf16.mxu1 %v3577_v44  ;;  %v335_v41 = vld [vmem:[%s4712_s2] sm:$0x7] }
  0x3b   : > { %727 = vmatpush1.bf16.msra.mxu0 %v3570_v43 }
  0x3c   : > { %728 = vmatprep.subr.bf16.mxu0 %v3572_v46 }
  0x3f   : > { %729 = vmatpush1.bf16.msra.mxu0 %v3574_v48  ;;  %899 = vmatmul.mubr.bf16.gmra.mrb[8].mxu1 %v3580_v51 }
  0x40   : > { %730 = vmatprep.subr.bf16.mxu0 %v3575_v49  ;;  %906 = vmatprep.mubr.bf16.mxu1 %v3586_v53 }
  0x43   : > { %731 = vmatpush1.bf16.msra.mxu0 %v3579_v50 }
  0x44   : > { %732 = vmatprep.subr.bf16.mxu0 %v3581_v52 }
  0x47   : > { %733 = vmatpush1.bf16.msra.mxu0 %v3583_v54  ;;  %907 = vmatmul.mubr.bf16.gmra.mrb[12].mxu1 %v3589_v56 }
  0x48   : > { %734 = vmatprep.subr.bf16.mxu0 %v3584_v55  ;;  %3187 = vmatprep.mubr.msk.bf16.mxu1 %vm681_vm1, %v3593_v57 }
  0x4b   : > { %735 = vmatpush1.bf16.msra.mxu0 %v3588_v58 }
  0x4c   : > { %2794 = vmatprep.subr.msk.bf16.mxu0 %vm694_vm0, %v3591_v59 }
  0x4e   : > { %737 = vmatmul.mubr.bf16.vlgmr.msra.gmra.mrb[0].mxu0 %v3559_v36 }
  0x4f   : > { %778 = vmatpush1.bf16.msra.mxu0 %v696_v61  ;;  %746 = vmatprep.mubr.bf16.mxu0 %v3568_v37  ;;  %v338_v37 = vshrl.u32 %v337_v32, 7 }
  0x50   : > { %3188 = vmatmul.mubr.msk.bf16.vlgmr.msra.gmra.mrb[16].mxu1 %vm681_vm1, %v3595_v62  ;;  %3470 = vmatprep.subr.msk.bf16.mxu0 %vm694_vm0, %v3602_v6 }
  0x51   : > { %3191 = vmatprep.mubr.msk.bf16.mxu1 %vm681_vm1, %v3596_v63  ;;  %3005 = vmatpush3.bf16.msra.mxu1 %v3599_v3  ;;  %v347_v40 = vsub.s32 2, %v338_v37 }
  0x52   : > { %3006 = vmatprep.subr.bf16.mxu1 %v3600_v4 }
  0x53   : > { %v348_v46 = vrot.slane %v335_v41, %v347_v40 }
  0x55   : > { %3007 = vmatpush3.bf16.msra.mxu1 %v3601_v5 }
  0x56   : > { %747 = vmatmul.mubr.bf16.gmra.mrb[4].mxu0 %v3571_v42  ;;  %3008 = vmatprep.subr.bf16.mxu1 %v3603_v7 }
  0x57   : > { %756 = vmatprep.mubr.bf16.mxu0 %v3577_v44 }
  0x58   : > { %3192 = vmatmul.mubr.msk.bf16.gmra.mrb[20].mxu1 %vm681_vm1, %v3597_v0 }
  0x59   : > { %3009 = vmatpush3.bf16.msra.mxu1 %v3604_v9 }
  0x5a   : > { %3010 = vmatprep.subr.bf16.mxu1 %v3605_v10 }
  0x5d   : > { %3011 = vmatpush3.bf16.msra.mxu1 %v3606_v11 }
  0x5e   : > { %757 = vmatmul.mubr.bf16.gmra.mrb[8].mxu0 %v3580_v51  ;;  %3012 = vmatprep.subr.bf16.mxu1 %v3607_v12 }
  0x5f   : > { %766 = vmatprep.mubr.bf16.mxu0 %v3586_v53 }
  0x61   : > { %3013 = vmatpush3.bf16.msra.mxu1 %v3608_v13 }
  0x62   : > { %3014 = vmatprep.subr.bf16.mxu1 %v3609_v14 }
  0x65   : > { %3015 = vmatpush3.bf16.msra.mxu1 %v3610_v15 }
  0x66   : > { %767 = vmatmul.mubr.bf16.gmra.mrb[12].mxu0 %v3589_v56  ;;  %3016 = vmatprep.subr.bf16.mxu1 %v3611_v16 }
  0x67   : > { %809 = vmatprep.mubr.bf16.mxu0 %v3679_v1 }
  0x69   : > { %3017 = vmatpush3.bf16.msra.mxu1 %v3612_v17 }
  0x6a   : > { %3018 = vmatprep.subr.bf16.mxu1 %v3613_v18 }
  0x6d   : > { %3019 = vmatpush3.bf16.msra.mxu1 %v3614_v19 }
  0x6e   : > { %2795 = vmatmul.mubr.msk.bf16.vlgmr.msra.gmra.mrb[0].mxu0 %vm681_vm1, %v3593_v57 }
  0x6f   : > { %819 = vmatprep.mubr.bf16.mxu0 %v3679_v1  ;;  %3196 = vmatpush3.bf16.msra.mxu0 %v1171_v8 }
  0x76   : > { %2796 = vmatmul.mubr.msk.bf16.gmra.mrb[4].mxu0 %vm681_vm1, %v3595_v62 }
  0x77   : > { %829 = vmatprep.mubr.bf16.mxu0 %v3679_v1 }
  0x7e   : > { %2797 = vmatmul.mubr.msk.bf16.gmra.mrb[8].mxu0 %vm681_vm1, %v3596_v63 }
  0x7f   : > { %839 = vmatprep.mubr.bf16.mxu0 %v3679_v1 }
  0x86   : > { %2798 = vmatmul.mubr.msk.bf16.gmra.mrb[12].mxu0 %vm681_vm1, %v3597_v0 }
 0x102   : > { %v2975_v20 = vpop.f32.mrb[0].mxu1 }
 0x103   : > { %v2976_v21 = vpop.f32.mrb[1].mxu1 }
 0x104   : > { %v2977_v22 = vadd.f32 %v2976_v21, %v2975_v20  ;;  %v2978_v23 = vpop.f32.mrb[2].mxu1  ;;  %v339_v21 = vsub.s32 0, %v338_v37 }
 0x105   : > { %v2979_v24 = vpop.f32.mrb[3].mxu1 }
 0x106   : > { %v2980_v25 = vadd.f32 %v2979_v24, %v2978_v23  ;;  %v885_v50 = vadd.f32 %v2977_v22, %v348_v46  ;;  %v343_v22 = vsub.s32 1, %v338_v37  ;;  %v340_v23 = vrot.slane %v335_v41, %v339_v21 }
 0x108   : > { %v888_v53 = vadd.f32 %v2980_v25, %v348_v46  ;;  %v344_v24 = vrot.slane %v335_v41, %v343_v22 }
 0x10a   : > { %v2981_v26 = vpop.f32.mrb[4].mxu1 }
 0x10b   : > { %v2982_v27 = vpop.f32.mrb[5].mxu1 }
 0x10c   : > { %v2983_v28 = vadd.f32 %v2982_v27, %v2981_v26  ;;  %v2984_v29 = vpop.f32.mrb[6].mxu1 }
 0x10d   : > { %v2985_v30 = vpop.f32.mrb[7].mxu1 }
 0x10e   : > { %v2986_v31 = vadd.f32 %v2985_v30, %v2984_v29  ;;  %v893_v49 = vadd.f32 %v2983_v28, %v348_v46 }
 0x110   : > { %v896_v51 = vadd.f32 %v2986_v31, %v348_v46 }
 0x112   : > { %v2987_v33 = vpop.f32.mrb[8].mxu1 }
 0x113   : > { %v2988_v34 = vpop.f32.mrb[9].mxu1 }
 0x114   : > { %v2989_v35 = vadd.f32 %v2988_v34, %v2987_v33  ;;  %v2990_v36 = vpop.f32.mrb[10].mxu1 }
 0x115   : > { %v2991_v38 = vpop.f32.mrb[11].mxu1 }
 0x116   : > { %v2992_v39 = vadd.f32 %v2991_v38, %v2990_v36  ;;  %v901_v2 = vadd.f32 %v2989_v35, %v348_v46 }
 0x118   : > { %v904_v7 = vadd.f32 %v2992_v39, %v348_v46 }
 0x11a   : > { %v2993_v42 = vpop.f32.mrb[12].mxu1 }
 0x11b   : > { %v2994_v43 = vpop.f32.mrb[13].mxu1 }
 0x11c   : > { %v2995_v44 = vadd.f32 %v2994_v43, %v2993_v42  ;;  %v2996_v45 = vpop.f32.mrb[14].mxu1 }
 0x11d   : > { %v2997_v47 = vpop.f32.mrb[15].mxu1 }
 0x11e   : > { %v2998_v48 = vadd.f32 %v2997_v47, %v2996_v45  ;;  %v909_v0 = vadd.f32 %v2995_v44, %v348_v46 }
 0x120   : > { %v912_v4 = vadd.f32 %v2998_v48, %v348_v46 }
 0x123   : > { %v3189_v52 = vpop.f32.mrb[16].mxu1 }
 0x124   : > { %v958_v54 = vadd.f32 %v3189_v52, %v893_v49  ;;  %v949_v55 = vpop.f32.mrb[17].mxu1 }
 0x125   : > { %v950_v56 = vadd.f32 %v949_v55, %v885_v50  ;;  %v3190_v57 = vpop.f32.mrb[18].mxu1 }
 0x126   : > { %v988_v58 = vmax.f32 %v958_v54, 0.0  ;;  %v961_v59 = vadd.f32 %v3190_v57, %v896_v51  ;;  %v952_v60 = vpop.f32.mrb[19].mxu1 }
 0x127   : > { %v982_v61 = vmax.f32 %v950_v56, 0.0  ;;  %v953_v62 = vadd.f32 %v952_v60, %v888_v53 }
 0x128   : > { %v991_v63 = vmax.f32 %v961_v59, 0.0 }
 0x129   : > { %v985_v1 = vmax.f32 %v953_v62, 0.0 }
 0x12a   : > { %v1009_v3 = vpack.c.bf16 %v991_v63, %v988_v58 }
 0x12b   : > { %v1006_v5 = vpack.c.bf16 %v985_v1, %v982_v61  ;;  %v3193_v6 = vpop.f32.mrb[20].mxu1 }
 0x12c   : > { %v974_v8 = vadd.f32 %v3193_v6, %v909_v0  ;;  %v965_v9 = vpop.f32.mrb[21].mxu1 }
 0x12d   : > { %3197 = vmatprep.mubr.msk.bf16.mxu0 %vm681_vm1, %v1006_v5  ;;  %v966_v10 = vadd.f32 %v965_v9, %v901_v2  ;;  %v3194_v11 = vpop.f32.mrb[22].mxu1 }
 0x12e   : > { %3198 = vmatmul.mubr.msk.bf16.vlgmr.msra.gmra.mrb[16].mxu0 %vm681_vm1, %v1009_v3  ;;  %v1000_v12 = vmax.f32 %v974_v8, 0.0  ;;  %v977_v13 = vadd.f32 %v3194_v11, %v912_v4  ;;  %v968_v14 = vpop.f32.mrb[23].mxu1 }
 0x12f   : > { %v994_v15 = vmax.f32 %v966_v10, 0.0  ;;  %v969_v16 = vadd.f32 %v968_v14, %v904_v7 }
 0x130   : > { %v1003_v17 = vmax.f32 %v977_v13, 0.0 }
 0x131   : > { %v997_v18 = vmax.f32 %v969_v16, 0.0 }
 0x132   : > { %v1015_v19 = vpack.c.bf16 %v1003_v17, %v1000_v12  ;;  %v1363_v17 = vld [vmem:[%s4715_s5 + $0x1e0] sm:$0xff] }
 0x133   : > { %v1012_v20 = vpack.c.bf16 %v997_v18, %v994_v15  ;;  %v1303_v18 = vld [vmem:[%s4715_s5] sm:$0xff] }
 0x135   : > { %3201 = vmatprep.mubr.msk.bf16.mxu0 %vm681_vm1, %v1012_v20 }
 0x136   : > { %3202 = vmatmul.mubr.msk.bf16.gmra.mrb[20].mxu0 %vm681_vm1, %v1015_v19 }
 0x137   : > { %3221 = vmatprep.mubr.msk.f32.mxu0 %vm1431_vm2, %v1303_v18  ;;  %v1369_v18 = vld [vmem:[%s4715_s5 + $0x210] sm:$0xff] }
 0x141   : > { %v811_v25 = vpop.f32.mrb[0].mxu0 }
 0x142   : > { %v3437_v26 = vadd.f32 %v811_v25, %v340_v23  ;;  %v813_v27 = vpop.f32.mrb[1].mxu0 }
 0x143   : > { %v3438_v28 = vadd.f32 %v813_v27, %v344_v24  ;;  %v815_v29 = vpop.f32.mrb[2].mxu0 }
 0x144   : > { %v3439_v30 = vadd.f32 %v815_v29, %v340_v23  ;;  %v817_v31 = vpop.f32.mrb[3].mxu0  ;;  %v980_v33 = vmax.f32 %v3437_v26, 0.0 }
 0x145   : > { %v3440_v32 = vadd.f32 %v817_v31, %v344_v24  ;;  %v981_v35 = vmax.f32 %v3438_v28, 0.0  ;;  %v2803_v28 = vld [vmem:[%s4714_s4] ss:$0 sm:$0xff] }
 0x146   : > { %v983_v34 = vmax.f32 %v3439_v30, 0.0 }
 0x147   : > { %v984_v36 = vmax.f32 %v3440_v32, 0.0 }
 0x148   : > { %v1004_v38 = vpack.c.bf16 %v983_v34, %v980_v33 }
 0x149   : > { %v1005_v39 = vpack.c.bf16 %v984_v36, %v981_v35  ;;  %v821_v40 = vpop.f32.mrb[4].mxu0 }
 0x14a   : > { %v3441_v42 = vadd.f32 %v821_v40, %v340_v23  ;;  %v823_v43 = vpop.f32.mrb[5].mxu0 }
 0x14b   : > { %v3442_v37 = vadd.f32 %v823_v43, %v344_v24  ;;  %v825_v44 = vpop.f32.mrb[6].mxu0  ;;  %1205 = vmatprep.mubr.bf16.mxu1 %v1005_v39 }
 0x14c   : > { %v3443_v41 = vadd.f32 %v825_v44, %v340_v23  ;;  %v827_v45 = vpop.f32.mrb[7].mxu0  ;;  %1206 = vmatmul.mubr.bf16.vlgmr.msra.gmra.mrb[24].mxu1 %v1004_v38  ;;  %v986_v47 = vmax.f32 %v3441_v42, 0.0 }
 0x14d   : > { %v3444_v46 = vadd.f32 %v827_v45, %v344_v24  ;;  %v987_v49 = vmax.f32 %v3442_v37, 0.0 }
 0x14e   : > { %v989_v48 = vmax.f32 %v3443_v41, 0.0 }
 0x14f   : > { %v990_v50 = vmax.f32 %v3444_v46, 0.0 }
 0x150   : > { %v1007_v51 = vpack.c.bf16 %v989_v48, %v986_v47 }
 0x151   : > { %v1008_v52 = vpack.c.bf16 %v990_v50, %v987_v49  ;;  %v831_v53 = vpop.f32.mrb[8].mxu0 }
 0x152   : > { %v3445_v54 = vadd.f32 %v831_v53, %v340_v23  ;;  %v833_v55 = vpop.f32.mrb[9].mxu0 }
 0x153   : > { %v3446_v56 = vadd.f32 %v833_v55, %v344_v24  ;;  %v835_v57 = vpop.f32.mrb[10].mxu0  ;;  %1213 = vmatprep.mubr.bf16.mxu1 %v1008_v52 }
 0x154   : > { %v3447_v58 = vadd.f32 %v835_v57, %v340_v23  ;;  %v837_v59 = vpop.f32.mrb[11].mxu0  ;;  %1214 = vmatmul.mubr.bf16.gmra.mrb[28].mxu1 %v1007_v51  ;;  %v992_v61 = vmax.f32 %v3445_v54, 0.0 }
 0x155   : > { %v3448_v60 = vadd.f32 %v837_v59, %v344_v24  ;;  %v993_v63 = vmax.f32 %v3446_v56, 0.0 }
 0x156   : > { %v995_v62 = vmax.f32 %v3447_v58, 0.0 }
 0x157   : > { %v996_v0 = vmax.f32 %v3448_v60, 0.0 }
 0x158   : > { %v1010_v1 = vpack.c.bf16 %v995_v62, %v992_v61 }
 0x159   : > { %v1011_v2 = vpack.c.bf16 %v996_v0, %v993_v63  ;;  %v841_v3 = vpop.f32.mrb[12].mxu0 }
 0x15a   : > { %v3449_v4 = vadd.f32 %v841_v3, %v340_v23  ;;  %v843_v5 = vpop.f32.mrb[13].mxu0 }
 0x15b   : > { %v3450_v6 = vadd.f32 %v843_v5, %v344_v24  ;;  %v845_v7 = vpop.f32.mrb[14].mxu0  ;;  %1221 = vmatprep.mubr.bf16.mxu1 %v1011_v2 }
 0x15c   : > { %v3451_v8 = vadd.f32 %v845_v7, %v340_v23  ;;  %v847_v9 = vpop.f32.mrb[15].mxu0  ;;  %1222 = vmatmul.mubr.bf16.gmra.mrb[32].mxu1 %v1010_v1  ;;  %v998_v11 = vmax.f32 %v3449_v4, 0.0 }
 0x15d   : > { %v3452_v10 = vadd.f32 %v847_v9, %v344_v24  ;;  %v999_v13 = vmax.f32 %v3450_v6, 0.0  ;;  %v1304_v9 = vld [vmem:[%s4715_s5 + $0x8] sm:$0xff] }
 0x15e   : > { %v1001_v12 = vmax.f32 %v3451_v8, 0.0  ;;  %v1364_v8 = vld [vmem:[%s4715_s5 + $0x1e8] sm:$0xff] }
 0x15f   : > { %v1002_v14 = vmax.f32 %v3452_v10, 0.0  ;;  %v1365_v10 = vld [vmem:[%s4715_s5 + $0x1f0] sm:$0xff] }
 0x160   : > { %v1013_v15 = vpack.c.bf16 %v1001_v12, %v998_v11  ;;  %v1305_v11 = vld [vmem:[%s4715_s5 + $0x10] sm:$0xff]  ;;  %v1366_v12 = vld [vmem:[%s4715_s5 + $0x1f8] sm:$0xff] }
 0x161   : > { %v1014_v16 = vpack.c.bf16 %v1002_v14, %v999_v13  ;;  %v1306_v13 = vld [vmem:[%s4715_s5 + $0x18] sm:$0xff]  ;;  %v1367_v14 = vld [vmem:[%s4715_s5 + $0x200] sm:$0xff] }
 0x163   : > { %1229 = vmatprep.mubr.bf16.mxu1 %v1014_v16  ;;  %v1368_v16 = vld [vmem:[%s4715_s5 + $0x208] sm:$0xff] }
 0x164   : > { %1230 = vmatmul.mubr.bf16.gmra.mrb[36].mxu1 %v1013_v15  ;;  %v1307_v15 = vld [vmem:[%s4715_s5 + $0x20] sm:$0xff] }
 0x165   : > { %3311 = vmatprep.mubr.msk.f32.mxu1 %vm1431_vm2, %v1363_v17  ;;  %v1308_v17 = vld [vmem:[%s4715_s5 + $0x28] sm:$0xff] }
 0x201   : > { %v3199_v19 = vpop.f32.mrb[16].mxu0 }
 0x202   : > { %v1272_v20 = vpop.f32.mrb[17].mxu0 }
 0x203   : > { %v3200_v21 = vpop.f32.mrb[18].mxu0 }
 0x204   : > { %v1275_v22 = vpop.f32.mrb[19].mxu0 }
 0x209   : > { %v3203_v23 = vpop.f32.mrb[20].mxu0 }
 0x20a   : > { %v1288_v24 = vpop.f32.mrb[21].mxu0 }
 0x20b   : > { %v3204_v25 = vpop.f32.mrb[22].mxu0 }
 0x20c   : > { %v1291_v26 = vpop.f32.mrb[23].mxu0 }
 0x21f   : > { %v3020_v27 = vpop.f32.mrb[24].mxu1 }
 0x220   : > { %v3021_v29 = vpop.f32.mrb[25].mxu1 }
 0x221   : > { %v3022_v30 = vadd.f32 %v3021_v29, %v3020_v27  ;;  %v3023_v31 = vpop.f32.mrb[26].mxu1  ;;  %v1313_v27 = vld [vmem:[%s4715_s5 + $0x50] sm:$0xff]  ;;  %v1314_v29 = vld [vmem:[%s4715_s5 + $0x58] sm:$0xff] }
 0x222   : > { %v3024_v32 = vpop.f32.mrb[27].mxu1 }
 0x223   : > { %v1208_v33 = vadd.f32 %v3022_v30, %v2803_v28  ;;  %v3025_v34 = vadd.f32 %v3024_v32, %v3023_v31  ;;  %v1375_v30 = vld [vmem:[%s4715_s5 + $0x240] sm:$0xff]  ;;  %v1376_v32 = vld [vmem:[%s4715_s5 + $0x248] sm:$0xff] }
 0x224   : > { %v1315_v31 = vld [vmem:[%s4715_s5 + $0x60] sm:$0xff] }
 0x225   : > { %v1273_v35 = vadd.f32 %v1272_v20, %v1208_v33  ;;  %v1211_v36 = vadd.f32 %v3025_v34, %v2803_v28  ;;  %v1370_v20 = vld [vmem:[%s4715_s5 + $0x218] sm:$0xff]  ;;  %v1316_v33 = vld [vmem:[%s4715_s5 + $0x68] sm:$0xff]  ;;  %v1377_v34 = vld [vmem:[%s4715_s5 + $0x250] sm:$0xff] }
 0x227   : > { %v1276_v38 = vadd.f32 %v1275_v22, %v1211_v36  ;;  %v3026_v39 = vpop.f32.mrb[28].mxu1  ;;  %v1371_v22 = vld [vmem:[%s4715_s5 + $0x220] sm:$0xff]  ;;  %v1378_v36 = vld [vmem:[%s4715_s5 + $0x258] sm:$0xff] }
 0x228   : > { %v3027_v40 = vpop.f32.mrb[29].mxu1 }
 0x229   : > { %v3413_v42 = vpack.c.bf16 %v1276_v38, %v1273_v35  ;;  %v3028_v43 = vadd.f32 %v3027_v40, %v3026_v39  ;;  %v3029_v37 = vpop.f32.mrb[30].mxu1  ;;  %v1317_v35 = vld [vmem:[%s4715_s5 + $0x70] sm:$0xff]  ;;  %v1318_v38 = vld [vmem:[%s4715_s5 + $0x78] sm:$0xff]  ;;  %v1379_v39 = vld [vmem:[%s4715_s5 + $0x260] sm:$0xff] }
 0x22a   : > { %v3030_v44 = vpop.f32.mrb[31].mxu1  ;;  %v1319_v40 = vld [vmem:[%s4715_s5 + $0x80] sm:$0xff] }
 0x22b   : > { %v1216_v41 = vadd.f32 %v3028_v43, %v2803_v28  ;;  %v3031_v45 = vadd.f32 %v3030_v44, %v3029_v37  ;;  %3414 = vmatprep.subr.bf16.mxu0 %v3413_v42  ;;  %3429 = vmatprep.subr.bf16.mxu1 %v3413_v42  ;;  %v1320_v43 = vld [vmem:[%s4715_s5 + $0x88] sm:$0xff]  ;;  %v1381_v37 = vld [vmem:[%s4715_s5 + $0x270] sm:$0xff] }
 0x22c   : > { %3416 = vmatpush3.bf16.msra.mxu0 %v3413_v42  ;;  %3433 = vmatpush3.bf16.msra.mxu1 %v3413_v42  ;;  %v1380_v42 = vld [vmem:[%s4715_s5 + $0x268] sm:$0xff]  ;;  %v1321_v44 = vld [vmem:[%s4715_s5 + $0x90] sm:$0xff] }
 0x22d   : > { %v1281_v46 = vadd.f32 %v3199_v19, %v1216_v41  ;;  %v1219_v47 = vadd.f32 %v3031_v45, %v2803_v28  ;;  %v1309_v19 = vld [vmem:[%s4715_s5 + $0x30] sm:$0xff]  ;;  %v1382_v41 = vld [vmem:[%s4715_s5 + $0x278] sm:$0xff] }
 0x22e   : > { %v1322_v45 = vld [vmem:[%s4715_s5 + $0x98] sm:$0xff] }
 0x22f   : > { %v1284_v48 = vadd.f32 %v3200_v21, %v1219_v47  ;;  %v3032_v49 = vpop.f32.mrb[32].mxu1  ;;  %v1310_v21 = vld [vmem:[%s4715_s5 + $0x38] sm:$0xff]  ;;  %v1323_v47 = vld [vmem:[%s4715_s5 + $0xa0] sm:$0xff] }
 0x230   : > { %v3033_v50 = vpop.f32.mrb[33].mxu1 }
 0x231   : > { %v3417_v51 = vpack.c.bf16 %v1284_v48, %v1281_v46  ;;  %v3034_v52 = vadd.f32 %v3033_v50, %v3032_v49  ;;  %v3035_v53 = vpop.f32.mrb[34].mxu1  ;;  %v1383_v46 = vld [vmem:[%s4715_s5 + $0x280] sm:$0xff]  ;;  %v1384_v48 = vld [vmem:[%s4715_s5 + $0x288] sm:$0xff]  ;;  %v1385_v50 = vld [vmem:[%s4715_s5 + $0x290] sm:$0xff] }
 0x232   : > { %v3036_v54 = vpop.f32.mrb[35].mxu1  ;;  %v1324_v49 = vld [vmem:[%s4715_s5 + $0xa8] sm:$0xff] }
 0x233   : > { %v1224_v55 = vadd.f32 %v3034_v52, %v2803_v28  ;;  %v3037_v56 = vadd.f32 %v3036_v54, %v3035_v53  ;;  %3418 = vmatprep.subr.bf16.mxu0 %v3417_v51  ;;  %3430 = vmatprep.subr.bf16.mxu1 %v3417_v51  ;;  %v1386_v52 = vld [vmem:[%s4715_s5 + $0x298] sm:$0xff]  ;;  %v1387_v54 = vld [vmem:[%s4715_s5 + $0x2a0] sm:$0xff] }
 0x234   : > { %3420 = vmatpush3.bf16.msra.mxu0 %v3417_v51  ;;  %3434 = vmatpush3.bf16.msra.mxu1 %v3417_v51  ;;  %v1325_v51 = vld [vmem:[%s4715_s5 + $0xb0] sm:$0xff]  ;;  %v1326_v53 = vld [vmem:[%s4715_s5 + $0xb8] sm:$0xff] }
 0x235   : > { %v1289_v57 = vadd.f32 %v1288_v24, %v1224_v55  ;;  %v1227_v58 = vadd.f32 %v3037_v56, %v2803_v28  ;;  %v1372_v24 = vld [vmem:[%s4715_s5 + $0x228] sm:$0xff]  ;;  %v1327_v55 = vld [vmem:[%s4715_s5 + $0xc0] sm:$0xff] }
 0x236   : > { %v1388_v56 = vld [vmem:[%s4715_s5 + $0x2a8] sm:$0xff] }
 0x237   : > { %v1292_v59 = vadd.f32 %v1291_v26, %v1227_v58  ;;  %v3038_v60 = vpop.f32.mrb[36].mxu1  ;;  %v1373_v26 = vld [vmem:[%s4715_s5 + $0x230] sm:$0xff] }
 0x238   : > { %v3039_v61 = vpop.f32.mrb[37].mxu1  ;;  %v1389_v58 = vld [vmem:[%s4715_s5 + $0x2b0] sm:$0xff] }
 0x239   : > { %v3421_v62 = vpack.c.bf16 %v1292_v59, %v1289_v57  ;;  %v3040_v63 = vadd.f32 %v3039_v61, %v3038_v60  ;;  %v3041_v0 = vpop.f32.mrb[38].mxu1  ;;  %v1328_v57 = vld [vmem:[%s4715_s5 + $0xc8] sm:$0xff]  ;;  %v1329_v59 = vld [vmem:[%s4715_s5 + $0xd0] sm:$0xff]  ;;  %v1390_v60 = vld [vmem:[%s4715_s5 + $0x2b8] sm:$0xff] }
 0x23a   : > { %v3042_v1 = vpop.f32.mrb[39].mxu1  ;;  %v1330_v61 = vld [vmem:[%s4715_s5 + $0xd8] sm:$0xff] }
 0x23b   : > { %v1232_v2 = vadd.f32 %v3040_v63, %v2803_v28  ;;  %v3043_v3 = vadd.f32 %v3042_v1, %v3041_v0  ;;  %3422 = vmatprep.subr.bf16.mxu0 %v3421_v62  ;;  %3431 = vmatprep.subr.bf16.mxu1 %v3421_v62  ;;  %v1331_v63 = vld [vmem:[%s4715_s5 + $0xe0] sm:$0xff]  ;;  %v1392_v0 = vld [vmem:[%s4715_s5 + $0x2c8] sm:$0xff] }
 0x23c   : > { %3424 = vmatpush3.bf16.msra.mxu0 %v3421_v62  ;;  %3435 = vmatpush3.bf16.msra.mxu1 %v3421_v62  ;;  %v1391_v62 = vld [vmem:[%s4715_s5 + $0x2c0] sm:$0xff]  ;;  %v1332_v1 = vld [vmem:[%s4715_s5 + $0xe8] sm:$0xff] }
 0x23d   : > { %v1297_v4 = vadd.f32 %v3203_v23, %v1232_v2  ;;  %v1235_v5 = vadd.f32 %v3043_v3, %v2803_v28  ;;  %v1311_v23 = vld [vmem:[%s4715_s5 + $0x40] sm:$0xff]  ;;  %v1374_v28 = vld [vmem:[%s4715_s5 + $0x238] sm:$0xff]  ;;  %v1393_v2 = vld [vmem:[%s4715_s5 + $0x2d0] sm:$0xff] }
 0x23e   : > { %v1333_v3 = vld [vmem:[%s4715_s5 + $0xf0] sm:$0xff] }
 0x23f   : > { %v1300_v6 = vadd.f32 %v3204_v25, %v1235_v5  ;;  %v1312_v25 = vld [vmem:[%s4715_s5 + $0x48] sm:$0xff]  ;;  %v1334_v5 = vld [vmem:[%s4715_s5 + $0xf8] sm:$0xff] }
 0x241   : > { %v3425_v7 = vpack.c.bf16 %v1300_v6, %v1297_v4  ;;  %v1394_v4 = vld [vmem:[%s4715_s5 + $0x2d8] sm:$0xff]  ;;  %v1395_v6 = vld [vmem:[%s4715_s5 + $0x2e0] sm:$0xff] }
 0x243   : > { %3426 = vmatprep.subr.bf16.mxu0 %v3425_v7  ;;  %3432 = vmatprep.subr.bf16.mxu1 %v3425_v7 }
 0x244   : > { %3428 = vmatpush3.bf16.msra.mxu0 %v3425_v7  ;;  %3436 = vmatpush3.bf16.msra.mxu1 %v3425_v7  ;;  %v1335_v7 = vld [vmem:[%s4715_s5 + $0x100] sm:$0xff] }
 0x247   : > { %3312 = vmatmul.mubr.msk.f32.vlgmr.msra.gmra.mrb[40].mxu1 %vm1431_vm2, %v1364_v8  ;;  %3222 = vmatmul.mubr.msk.f32.vlgmr.msra.gmra.mrb[24].mxu0 %vm1431_vm2, %v1304_v9  ;;  %v1396_v8 = vld [vmem:[%s4715_s5 + $0x2e8] sm:$0xff] }
 0x248   : > { %3314 = vmatprep.mubr.msk.f32.mxu1 %vm1431_vm2, %v1365_v10  ;;  %3224 = vmatprep.mubr.msk.f32.mxu0 %vm1431_vm2, %v1305_v11  ;;  %v1336_v9 = vld [vmem:[%s4715_s5 + $0x108] sm:$0xff]  ;;  %v1397_v10 = vld [vmem:[%s4715_s5 + $0x2f0] sm:$0xff] }
 0x249   : > { %v1337_v11 = vld [vmem:[%s4715_s5 + $0x110] sm:$0xff] }
 0x24b   : > { %3315 = vmatmul.mubr.msk.f32.gmra.mrb[42].mxu1 %vm1431_vm2, %v1366_v12  ;;  %3225 = vmatmul.mubr.msk.f32.gmra.mrb[26].mxu0 %vm1431_vm2, %v1306_v13  ;;  %v1398_v12 = vld [vmem:[%s4715_s5 + $0x2f8] sm:$0xff] }
 0x24c   : > { %3317 = vmatprep.mubr.msk.f32.mxu1 %vm1431_vm2, %v1367_v14  ;;  %3227 = vmatprep.mubr.msk.f32.mxu0 %vm1431_vm2, %v1307_v15  ;;  %v1338_v13 = vld [vmem:[%s4715_s5 + $0x118] sm:$0xff]  ;;  %v1399_v14 = vld [vmem:[%s4715_s5 + $0x300] sm:$0xff] }
 0x24d   : > { %v1339_v15 = vld [vmem:[%s4715_s5 + $0x120] sm:$0xff] }
 0x24f   : > { %3318 = vmatmul.mubr.msk.f32.gmra.mrb[44].mxu1 %vm1431_vm2, %v1368_v16  ;;  %3228 = vmatmul.mubr.msk.f32.gmra.mrb[28].mxu0 %vm1431_vm2, %v1308_v17  ;;  %v1400_v16 = vld [vmem:[%s4715_s5 + $0x308] sm:$0xff] }
 0x250   : > { %3320 = vmatprep.mubr.msk.f32.mxu1 %vm1431_vm2, %v1369_v18  ;;  %3230 = vmatprep.mubr.msk.f32.mxu0 %vm1431_vm2, %v1309_v19  ;;  %v1340_v17 = vld [vmem:[%s4715_s5 + $0x128] sm:$0xff]  ;;  %v1401_v18 = vld [vmem:[%s4715_s5 + $0x310] sm:$0xff] }
 0x251   : > { %v1341_v19 = vld [vmem:[%s4715_s5 + $0x130] sm:$0xff] }
 0x253   : > { %3321 = vmatmul.mubr.msk.f32.gmra.mrb[46].mxu1 %vm1431_vm2, %v1370_v20  ;;  %3231 = vmatmul.mubr.msk.f32.gmra.mrb[30].mxu0 %vm1431_vm2, %v1310_v21  ;;  %v1402_v20 = vld [vmem:[%s4715_s5 + $0x318] sm:$0xff] }
 0x254   : > { %3323 = vmatprep.mubr.msk.f32.mxu1 %vm1431_vm2, %v1371_v22  ;;  %3233 = vmatprep.mubr.msk.f32.mxu0 %vm1431_vm2, %v1311_v23  ;;  %v1342_v21 = vld [vmem:[%s4715_s5 + $0x138] sm:$0xff]  ;;  %v1403_v22 = vld [vmem:[%s4715_s5 + $0x320] sm:$0xff] }
 0x255   : > { %v1343_v23 = vld [vmem:[%s4715_s5 + $0x140] sm:$0xff] }
 0x257   : > { %3324 = vmatmul.mubr.msk.f32.gmra.mrb[48].mxu1 %vm1431_vm2, %v1372_v24  ;;  %3234 = vmatmul.mubr.msk.f32.gmra.mrb[32].mxu0 %vm1431_vm2, %v1312_v25  ;;  %v1404_v24 = vld [vmem:[%s4715_s5 + $0x328] sm:$0xff] }
 0x258   : > { %3326 = vmatprep.mubr.msk.f32.mxu1 %vm1431_vm2, %v1373_v26  ;;  %3236 = vmatprep.mubr.msk.f32.mxu0 %vm1431_vm2, %v1313_v27  ;;  %v1344_v25 = vld [vmem:[%s4715_s5 + $0x148] sm:$0xff]  ;;  %v1405_v26 = vld [vmem:[%s4715_s5 + $0x330] sm:$0xff] }
 0x259   : > { %v1345_v27 = vld [vmem:[%s4715_s5 + $0x150] sm:$0xff] }
 0x25b   : > { %3327 = vmatmul.mubr.msk.f32.gmra.mrb[50].mxu1 %vm1431_vm2, %v1374_v28  ;;  %3237 = vmatmul.mubr.msk.f32.gmra.mrb[34].mxu0 %vm1431_vm2, %v1314_v29  ;;  %v1406_v28 = vld [vmem:[%s4715_s5 + $0x338] sm:$0xff] }
 0x25c   : > { %3329 = vmatprep.mubr.msk.f32.mxu1 %vm1431_vm2, %v1375_v30  ;;  %3239 = vmatprep.mubr.msk.f32.mxu0 %vm1431_vm2, %v1315_v31  ;;  %v1346_v29 = vld [vmem:[%s4715_s5 + $0x158] sm:$0xff]  ;;  %v1407_v30 = vld [vmem:[%s4715_s5 + $0x340] sm:$0xff] }
 0x25d   : > { %v1347_v31 = vld [vmem:[%s4715_s5 + $0x160] sm:$0xff] }
 0x25f   : > { %3330 = vmatmul.mubr.msk.f32.gmra.mrb[52].mxu1 %vm1431_vm2, %v1376_v32  ;;  %3240 = vmatmul.mubr.msk.f32.gmra.mrb[36].mxu0 %vm1431_vm2, %v1316_v33  ;;  %v1408_v32 = vld [vmem:[%s4715_s5 + $0x348] sm:$0xff] }
 0x260   : > { %3332 = vmatprep.mubr.msk.f32.mxu1 %vm1431_vm2, %v1377_v34  ;;  %3242 = vmatprep.mubr.msk.f32.mxu0 %vm1431_vm2, %v1317_v35  ;;  %v1348_v33 = vld [vmem:[%s4715_s5 + $0x168] sm:$0xff]  ;;  %v1409_v34 = vld [vmem:[%s4715_s5 + $0x350] sm:$0xff] }
 0x261   : > { %v1349_v35 = vld [vmem:[%s4715_s5 + $0x170] sm:$0xff] }
 0x263   : > { %3333 = vmatmul.mubr.msk.f32.gmra.mrb[54].mxu1 %vm1431_vm2, %v1378_v36  ;;  %3243 = vmatmul.mubr.msk.f32.gmra.mrb[38].mxu0 %vm1431_vm2, %v1318_v38  ;;  %v1410_v36 = vld [vmem:[%s4715_s5 + $0x358] sm:$0xff] }
 0x264   : > { %3335 = vmatprep.mubr.msk.f32.mxu1 %vm1431_vm2, %v1379_v39  ;;  %3245 = vmatprep.mubr.msk.f32.mxu0 %vm1431_vm2, %v1319_v40  ;;  %v1350_v38 = vld [vmem:[%s4715_s5 + $0x178] sm:$0xff]  ;;  %v1411_v39 = vld [vmem:[%s4715_s5 + $0x360] sm:$0xff] }
 0x265   : > { %v1351_v40 = vld [vmem:[%s4715_s5 + $0x180] sm:$0xff] }
 0x267   : > { %3336 = vmatmul.mubr.msk.f32.gmra.mrb[56].mxu1 %vm1431_vm2, %v1380_v42  ;;  %3246 = vmatmul.mubr.msk.f32.gmra.mrb[40].mxu0 %vm1431_vm2, %v1320_v43  ;;  %v1412_v42 = vld [vmem:[%s4715_s5 + $0x368] sm:$0xff] }
 0x268   : > { %3338 = vmatprep.mubr.msk.f32.mxu1 %vm1431_vm2, %v1381_v37  ;;  %3248 = vmatprep.mubr.msk.f32.mxu0 %vm1431_vm2, %v1321_v44  ;;  %v1352_v43 = vld [vmem:[%s4715_s5 + $0x188] sm:$0xff]  ;;  %v1413_v37 = vld [vmem:[%s4715_s5 + $0x370] sm:$0xff] }
 0x269   : > { %v1353_v44 = vld [vmem:[%s4715_s5 + $0x190] sm:$0xff] }
 0x26b   : > { %3339 = vmatmul.mubr.msk.f32.gmra.mrb[58].mxu1 %vm1431_vm2, %v1382_v41  ;;  %3249 = vmatmul.mubr.msk.f32.gmra.mrb[42].mxu0 %vm1431_vm2, %v1322_v45  ;;  %v1414_v41 = vld [vmem:[%s4715_s5 + $0x378] sm:$0xff] }
 0x26c   : > { %3341 = vmatprep.mubr.msk.f32.mxu1 %vm1431_vm2, %v1383_v46  ;;  %3251 = vmatprep.mubr.msk.f32.mxu0 %vm1431_vm2, %v1323_v47  ;;  %v1354_v45 = vld [vmem:[%s4715_s5 + $0x198] sm:$0xff]  ;;  %v1415_v46 = vld [vmem:[%s4715_s5 + $0x380] sm:$0xff] }
 0x26d   : > { %v1355_v47 = vld [vmem:[%s4715_s5 + $0x1a0] sm:$0xff] }
 0x26f   : > { %3342 = vmatmul.mubr.msk.f32.gmra.mrb[60].mxu1 %vm1431_vm2, %v1384_v48  ;;  %3252 = vmatmul.mubr.msk.f32.gmra.mrb[44].mxu0 %vm1431_vm2, %v1324_v49  ;;  %v1416_v48 = vld [vmem:[%s4715_s5 + $0x388] sm:$0xff] }
 0x270   : > { %3344 = vmatprep.mubr.msk.f32.mxu1 %vm1431_vm2, %v1385_v50  ;;  %3254 = vmatprep.mubr.msk.f32.mxu0 %vm1431_vm2, %v1325_v51  ;;  %v1356_v49 = vld [vmem:[%s4715_s5 + $0x1a8] sm:$0xff]  ;;  %v1417_v50 = vld [vmem:[%s4715_s5 + $0x390] sm:$0xff] }
 0x271   : > { %v1357_v51 = vld [vmem:[%s4715_s5 + $0x1b0] sm:$0xff] }
 0x273   : > { %3345 = vmatmul.mubr.msk.f32.gmra.mrb[62].mxu1 %vm1431_vm2, %v1386_v52  ;;  %3255 = vmatmul.mubr.msk.f32.gmra.mrb[46].mxu0 %vm1431_vm2, %v1326_v53  ;;  %v1418_v52 = vld [vmem:[%s4715_s5 + $0x398] sm:$0xff] }
 0x274   : > { %3347 = vmatprep.mubr.msk.f32.mxu1 %vm1431_vm2, %v1387_v54  ;;  %3257 = vmatprep.mubr.msk.f32.mxu0 %vm1431_vm2, %v1327_v55  ;;  %v1358_v53 = vld [vmem:[%s4715_s5 + $0x1b8] sm:$0xff]  ;;  %v1419_v54 = vld [vmem:[%s4715_s5 + $0x3a0] sm:$0xff] }
 0x275   : > { %v1359_v55 = vld [vmem:[%s4715_s5 + $0x1c0] sm:$0xff] }
 0x277   : > { %3348 = vmatmul.mubr.msk.f32.gmra.mrb[64].mxu1 %vm1431_vm2, %v1388_v56  ;;  %3258 = vmatmul.mubr.msk.f32.gmra.mrb[48].mxu0 %vm1431_vm2, %v1328_v57  ;;  %v1420_v56 = vld [vmem:[%s4715_s5 + $0x3a8] sm:$0xff] }
 0x278   : > { %3350 = vmatprep.mubr.msk.f32.mxu1 %vm1431_vm2, %v1389_v58  ;;  %3260 = vmatprep.mubr.msk.f32.mxu0 %vm1431_vm2, %v1329_v59  ;;  %v1360_v57 = vld [vmem:[%s4715_s5 + $0x1c8] sm:$0xff]  ;;  %v1421_v58 = vld [vmem:[%s4715_s5 + $0x3b0] sm:$0xff] }
 0x279   : > { %v1361_v59 = vld [vmem:[%s4715_s5 + $0x1d0] sm:$0xff] }
 0x27b   : > { %3351 = vmatmul.mubr.msk.f32.gmra.mrb[66].mxu1 %vm1431_vm2, %v1390_v60  ;;  %3261 = vmatmul.mubr.msk.f32.gmra.mrb[50].mxu0 %vm1431_vm2, %v1330_v61  ;;  %v1422_v60 = vld [vmem:[%s4715_s5 + $0x3b8] sm:$0xff] }
 0x27c   : > { %3353 = vmatprep.mubr.msk.f32.mxu1 %vm1431_vm2, %v1391_v62  ;;  %3263 = vmatprep.mubr.msk.f32.mxu0 %vm1431_vm2, %v1331_v63  ;;  %v1362_v61 = vld [vmem:[%s4715_s5 + $0x1d8] sm:$0xff]  ;;  %v1423_v62 = vld [vmem:[%s4715_s5 + $0x3c0] sm:$0xff]  ;;  %v1424_v63 = vld [vmem:[%s4715_s5 + $0x3c8] sm:$0xff] }
 0x27f   : > { %3354 = vmatmul.mubr.msk.f32.gmra.mrb[68].mxu1 %vm1431_vm2, %v1392_v0  ;;  %3264 = vmatmul.mubr.msk.f32.gmra.mrb[52].mxu0 %vm1431_vm2, %v1332_v1  ;;  %v1425_v0 = vld [vmem:[%s4715_s5 + $0x3d0] sm:$0xff]  ;;  %v1426_v1 = vld [vmem:[%s4715_s5 + $0x3d8] sm:$0xff] }
 0x280   : > { %3356 = vmatprep.mubr.msk.f32.mxu1 %vm1431_vm2, %v1393_v2  ;;  %3266 = vmatprep.mubr.msk.f32.mxu0 %vm1431_vm2, %v1333_v3  ;;  %v1427_v2 = vld [vmem:[%s4715_s5 + $0x3e0] sm:$0xff]  ;;  %v1428_v3 = vld [vmem:[%s4715_s5 + $0x3e8] sm:$0xff] }
 0x283   : > { %3357 = vmatmul.mubr.msk.f32.gmra.mrb[70].mxu1 %vm1431_vm2, %v1394_v4  ;;  %3267 = vmatmul.mubr.msk.f32.gmra.mrb[54].mxu0 %vm1431_vm2, %v1334_v5  ;;  %v1429_v4 = vld [vmem:[%s4715_s5 + $0x3f0] sm:$0xff]  ;;  %v1430_v5 = vld [vmem:[%s4715_s5 + $0x3f8] sm:$0xff] }
 0x284   : > { %3359 = vmatprep.mubr.msk.f32.mxu1 %vm1431_vm2, %v1395_v6  ;;  %3269 = vmatprep.mubr.msk.f32.mxu0 %vm1431_vm2, %v1335_v7 }
 0x287   : > { %3360 = vmatmul.mubr.msk.f32.gmra.mrb[72].mxu1 %vm1431_vm2, %v1396_v8  ;;  %3270 = vmatmul.mubr.msk.f32.gmra.mrb[56].mxu0 %vm1431_vm2, %v1336_v9 }
 0x288   : > { %3362 = vmatprep.mubr.msk.f32.mxu1 %vm1431_vm2, %v1397_v10  ;;  %3272 = vmatprep.mubr.msk.f32.mxu0 %vm1431_vm2, %v1337_v11 }
 0x28b   : > { %3363 = vmatmul.mubr.msk.f32.gmra.mrb[74].mxu1 %vm1431_vm2, %v1398_v12  ;;  %3273 = vmatmul.mubr.msk.f32.gmra.mrb[58].mxu0 %vm1431_vm2, %v1338_v13 }
 0x28c   : > { %3365 = vmatprep.mubr.msk.f32.mxu1 %vm1431_vm2, %v1399_v14  ;;  %3275 = vmatprep.mubr.msk.f32.mxu0 %vm1431_vm2, %v1339_v15 }
 0x28f   : > { %3366 = vmatmul.mubr.msk.f32.gmra.mrb[76].mxu1 %vm1431_vm2, %v1400_v16  ;;  %3276 = vmatmul.mubr.msk.f32.gmra.mrb[60].mxu0 %vm1431_vm2, %v1340_v17 }
 0x290   : > { %3368 = vmatprep.mubr.msk.f32.mxu1 %vm1431_vm2, %v1401_v18  ;;  %3278 = vmatprep.mubr.msk.f32.mxu0 %vm1431_vm2, %v1341_v19 }
 0x293   : > { %3369 = vmatmul.mubr.msk.f32.gmra.mrb[78].mxu1 %vm1431_vm2, %v1402_v20  ;;  %3279 = vmatmul.mubr.msk.f32.gmra.mrb[62].mxu0 %vm1431_vm2, %v1342_v21 }
 0x294   : > { %3371 = vmatprep.mubr.msk.f32.mxu1 %vm1431_vm2, %v1403_v22  ;;  %3281 = vmatprep.mubr.msk.f32.mxu0 %vm1431_vm2, %v1343_v23 }
 0x297   : > { %3372 = vmatmul.mubr.msk.f32.gmra.mrb[80].mxu1 %vm1431_vm2, %v1404_v24  ;;  %3282 = vmatmul.mubr.msk.f32.gmra.mrb[64].mxu0 %vm1431_vm2, %v1344_v25 }
 0x298   : > { %3374 = vmatprep.mubr.msk.f32.mxu1 %vm1431_vm2, %v1405_v26  ;;  %3284 = vmatprep.mubr.msk.f32.mxu0 %vm1431_vm2, %v1345_v27 }
 0x29b   : > { %3375 = vmatmul.mubr.msk.f32.gmra.mrb[82].mxu1 %vm1431_vm2, %v1406_v28  ;;  %3285 = vmatmul.mubr.msk.f32.gmra.mrb[66].mxu0 %vm1431_vm2, %v1346_v29 }
 0x29c   : > { %3377 = vmatprep.mubr.msk.f32.mxu1 %vm1431_vm2, %v1407_v30  ;;  %3287 = vmatprep.mubr.msk.f32.mxu0 %vm1431_vm2, %v1347_v31 }
 0x29f   : > { %3378 = vmatmul.mubr.msk.f32.gmra.mrb[84].mxu1 %vm1431_vm2, %v1408_v32  ;;  %3288 = vmatmul.mubr.msk.f32.gmra.mrb[68].mxu0 %vm1431_vm2, %v1348_v33 }
 0x2a0   : > { %3380 = vmatprep.mubr.msk.f32.mxu1 %vm1431_vm2, %v1409_v34  ;;  %3290 = vmatprep.mubr.msk.f32.mxu0 %vm1431_vm2, %v1349_v35 }
 0x2a3   : > { %3381 = vmatmul.mubr.msk.f32.gmra.mrb[86].mxu1 %vm1431_vm2, %v1410_v36  ;;  %3291 = vmatmul.mubr.msk.f32.gmra.mrb[70].mxu0 %vm1431_vm2, %v1350_v38 }
 0x2a4   : > { %3383 = vmatprep.mubr.msk.f32.mxu1 %vm1431_vm2, %v1411_v39  ;;  %3293 = vmatprep.mubr.msk.f32.mxu0 %vm1431_vm2, %v1351_v40 }
 0x2a7   : > { %3384 = vmatmul.mubr.msk.f32.gmra.mrb[88].mxu1 %vm1431_vm2, %v1412_v42  ;;  %3294 = vmatmul.mubr.msk.f32.gmra.mrb[72].mxu0 %vm1431_vm2, %v1352_v43 }
 0x2a8   : > { %3386 = vmatprep.mubr.msk.f32.mxu1 %vm1431_vm2, %v1413_v37  ;;  %3296 = vmatprep.mubr.msk.f32.mxu0 %vm1431_vm2, %v1353_v44 }
 0x2ab   : > { %3387 = vmatmul.mubr.msk.f32.gmra.mrb[90].mxu1 %vm1431_vm2, %v1414_v41  ;;  %3297 = vmatmul.mubr.msk.f32.gmra.mrb[74].mxu0 %vm1431_vm2, %v1354_v45 }
 0x2ac   : > { %3389 = vmatprep.mubr.msk.f32.mxu1 %vm1431_vm2, %v1415_v46  ;;  %3299 = vmatprep.mubr.msk.f32.mxu0 %vm1431_vm2, %v1355_v47 }
 0x2af   : > { %3390 = vmatmul.mubr.msk.f32.gmra.mrb[92].mxu1 %vm1431_vm2, %v1416_v48  ;;  %3300 = vmatmul.mubr.msk.f32.gmra.mrb[76].mxu0 %vm1431_vm2, %v1356_v49 }
 0x2b0   : > { %3392 = vmatprep.mubr.msk.f32.mxu1 %vm1431_vm2, %v1417_v50  ;;  %3302 = vmatprep.mubr.msk.f32.mxu0 %vm1431_vm2, %v1357_v51 }
 0x2b3   : > { %3393 = vmatmul.mubr.msk.f32.gmra.mrb[94].mxu1 %vm1431_vm2, %v1418_v52  ;;  %3303 = vmatmul.mubr.msk.f32.gmra.mrb[78].mxu0 %vm1431_vm2, %v1358_v53 }
 0x2b4   : > { %3395 = vmatprep.mubr.msk.f32.mxu1 %vm1431_vm2, %v1419_v54  ;;  %3305 = vmatprep.mubr.msk.f32.mxu0 %vm1431_vm2, %v1359_v55 }
 0x2b7   : > { %3396 = vmatmul.mubr.msk.f32.gmra.mrb[96].mxu1 %vm1431_vm2, %v1420_v56  ;;  %3306 = vmatmul.mubr.msk.f32.gmra.mrb[80].mxu0 %vm1431_vm2, %v1360_v57 }
 0x2b8   : > { %3398 = vmatprep.mubr.msk.f32.mxu1 %vm1431_vm2, %v1421_v58  ;;  %3308 = vmatprep.mubr.msk.f32.mxu0 %vm1431_vm2, %v1361_v59 }
 0x2bb   : > { %3399 = vmatmul.mubr.msk.f32.gmra.mrb[98].mxu1 %vm1431_vm2, %v1422_v60  ;;  %3309 = vmatmul.mubr.msk.f32.gmra.mrb[82].mxu0 %vm1431_vm2, %v1362_v61 }
 0x2bc   : > { %3401 = vmatprep.mubr.msk.f32.mxu1 %vm1431_vm2, %v1423_v62 }
 0x2bf   : > { %3402 = vmatmul.mubr.msk.f32.gmra.mrb[100].mxu1 %vm1431_vm2, %v1424_v63 }
 0x2c0   : > { %3404 = vmatprep.mubr.msk.f32.mxu1 %vm1431_vm2, %v1425_v0 }
 0x2c3   : > { %3405 = vmatmul.mubr.msk.f32.gmra.mrb[102].mxu1 %vm1431_vm2, %v1426_v1 }
 0x2c4   : > { %3407 = vmatprep.mubr.msk.f32.mxu1 %vm1431_vm2, %v1427_v2 }
 0x2c7   : > { %3408 = vmatmul.mubr.msk.f32.gmra.mrb[104].mxu1 %vm1431_vm2, %v1428_v3 }
 0x2c8   : > { %3410 = vmatprep.mubr.msk.f32.mxu1 %vm1431_vm2, %v1429_v4 }
 0x2cb   : > { %3411 = vmatmul.mubr.msk.f32.gmra.mrb[106].mxu1 %vm1431_vm2, %v1430_v5 }
 0x31a   : > { %v3313_v6 = vpop.f32.mrb[40].mxu1  ;;  %v3223_v7 = vpop.f32.mrb[24].mxu0 }
 0x31b   : > { %2582 = vst [vmem:[%s4528_s9 + $0x1e8] sm:$0xff] %v3313_v6  ;;  %v2182_v8 = vpop.f32.mrb[41].mxu1  ;;  %2522 = vst [vmem:[%s4528_s9 + $0x8] sm:$0xff] %v3223_v7  ;;  %v1882_v9 = vpop.f32.mrb[25].mxu0 }
 0x31c   : > { %2581 = vst [vmem:[%s4528_s9 + $0x1e0] sm:$0xff] %v2182_v8  ;;  %2521 = vst [vmem:[%s4528_s9] sm:$0xff] %v1882_v9 }
 0x31e   : > { %v3316_v10 = vpop.f32.mrb[42].mxu1  ;;  %v3226_v11 = vpop.f32.mrb[26].mxu0 }
 0x31f   : > { %2584 = vst [vmem:[%s4528_s9 + $0x1f8] sm:$0xff] %v3316_v10  ;;  %v2192_v12 = vpop.f32.mrb[43].mxu1  ;;  %2524 = vst [vmem:[%s4528_s9 + $0x18] sm:$0xff] %v3226_v11  ;;  %v1892_v13 = vpop.f32.mrb[27].mxu0 }
 0x320   : > { %2583 = vst [vmem:[%s4528_s9 + $0x1f0] sm:$0xff] %v2192_v12  ;;  %2523 = vst [vmem:[%s4528_s9 + $0x10] sm:$0xff] %v1892_v13 }
 0x322   : > { %v3319_v14 = vpop.f32.mrb[44].mxu1  ;;  %v3229_v15 = vpop.f32.mrb[28].mxu0 }
 0x323   : > { %2586 = vst [vmem:[%s4528_s9 + $0x208] sm:$0xff] %v3319_v14  ;;  %v2202_v16 = vpop.f32.mrb[45].mxu1  ;;  %2526 = vst [vmem:[%s4528_s9 + $0x28] sm:$0xff] %v3229_v15  ;;  %v1902_v17 = vpop.f32.mrb[29].mxu0 }
 0x324   : > { %2585 = vst [vmem:[%s4528_s9 + $0x200] sm:$0xff] %v2202_v16  ;;  %2525 = vst [vmem:[%s4528_s9 + $0x20] sm:$0xff] %v1902_v17 }
 0x326   : > { %v3322_v18 = vpop.f32.mrb[46].mxu1  ;;  %v3232_v19 = vpop.f32.mrb[30].mxu0 }
 0x327   : > { %2588 = vst [vmem:[%s4528_s9 + $0x218] sm:$0xff] %v3322_v18  ;;  %v2212_v20 = vpop.f32.mrb[47].mxu1  ;;  %2528 = vst [vmem:[%s4528_s9 + $0x38] sm:$0xff] %v3232_v19  ;;  %v1912_v21 = vpop.f32.mrb[31].mxu0 }
 0x328   : > { %2587 = vst [vmem:[%s4528_s9 + $0x210] sm:$0xff] %v2212_v20  ;;  %2527 = vst [vmem:[%s4528_s9 + $0x30] sm:$0xff] %v1912_v21 }
 0x32a   : > { %v3325_v22 = vpop.f32.mrb[48].mxu1  ;;  %v3235_v23 = vpop.f32.mrb[32].mxu0 }
 0x32b   : > { %2590 = vst [vmem:[%s4528_s9 + $0x228] sm:$0xff] %v3325_v22  ;;  %v2222_v24 = vpop.f32.mrb[49].mxu1  ;;  %2530 = vst [vmem:[%s4528_s9 + $0x48] sm:$0xff] %v3235_v23  ;;  %v1922_v25 = vpop.f32.mrb[33].mxu0 }
 0x32c   : > { %2589 = vst [vmem:[%s4528_s9 + $0x220] sm:$0xff] %v2222_v24  ;;  %2529 = vst [vmem:[%s4528_s9 + $0x40] sm:$0xff] %v1922_v25 }
 0x32e   : > { %v3328_v26 = vpop.f32.mrb[50].mxu1  ;;  %v3238_v27 = vpop.f32.mrb[34].mxu0 }
 0x32f   : > { %2592 = vst [vmem:[%s4528_s9 + $0x238] sm:$0xff] %v3328_v26  ;;  %v2232_v28 = vpop.f32.mrb[51].mxu1  ;;  %2532 = vst [vmem:[%s4528_s9 + $0x58] sm:$0xff] %v3238_v27  ;;  %v1932_v29 = vpop.f32.mrb[35].mxu0 }
 0x330   : > { %2591 = vst [vmem:[%s4528_s9 + $0x230] sm:$0xff] %v2232_v28  ;;  %2531 = vst [vmem:[%s4528_s9 + $0x50] sm:$0xff] %v1932_v29 }
 0x332   : > { %v3331_v30 = vpop.f32.mrb[52].mxu1  ;;  %v3241_v31 = vpop.f32.mrb[36].mxu0 }
 0x333   : > { %2594 = vst [vmem:[%s4528_s9 + $0x248] sm:$0xff] %v3331_v30  ;;  %v2242_v32 = vpop.f32.mrb[53].mxu1  ;;  %2534 = vst [vmem:[%s4528_s9 + $0x68] sm:$0xff] %v3241_v31  ;;  %v1942_v33 = vpop.f32.mrb[37].mxu0 }
 0x334   : > { %2593 = vst [vmem:[%s4528_s9 + $0x240] sm:$0xff] %v2242_v32  ;;  %2533 = vst [vmem:[%s4528_s9 + $0x60] sm:$0xff] %v1942_v33 }
 0x336   : > { %v3334_v34 = vpop.f32.mrb[54].mxu1  ;;  %v3244_v35 = vpop.f32.mrb[38].mxu0 }
 0x337   : > { %2596 = vst [vmem:[%s4528_s9 + $0x258] sm:$0xff] %v3334_v34  ;;  %v2252_v36 = vpop.f32.mrb[55].mxu1  ;;  %2536 = vst [vmem:[%s4528_s9 + $0x78] sm:$0xff] %v3244_v35  ;;  %v1952_v38 = vpop.f32.mrb[39].mxu0 }
 0x338   : > { %2595 = vst [vmem:[%s4528_s9 + $0x250] sm:$0xff] %v2252_v36  ;;  %2535 = vst [vmem:[%s4528_s9 + $0x70] sm:$0xff] %v1952_v38 }
 0x33a   : > { %v3337_v39 = vpop.f32.mrb[56].mxu1  ;;  %v3247_v40 = vpop.f32.mrb[40].mxu0 }
 0x33b   : > { %2598 = vst [vmem:[%s4528_s9 + $0x268] sm:$0xff] %v3337_v39  ;;  %v2262_v42 = vpop.f32.mrb[57].mxu1  ;;  %2538 = vst [vmem:[%s4528_s9 + $0x88] sm:$0xff] %v3247_v40  ;;  %v1962_v43 = vpop.f32.mrb[41].mxu0 }
 0x33c   : > { %2597 = vst [vmem:[%s4528_s9 + $0x260] sm:$0xff] %v2262_v42  ;;  %2537 = vst [vmem:[%s4528_s9 + $0x80] sm:$0xff] %v1962_v43 }
 0x33e   : > { %v3340_v37 = vpop.f32.mrb[58].mxu1  ;;  %v3250_v44 = vpop.f32.mrb[42].mxu0 }
 0x33f   : > { %2600 = vst [vmem:[%s4528_s9 + $0x278] sm:$0xff] %v3340_v37  ;;  %v2272_v41 = vpop.f32.mrb[59].mxu1  ;;  %2540 = vst [vmem:[%s4528_s9 + $0x98] sm:$0xff] %v3250_v44  ;;  %v1972_v45 = vpop.f32.mrb[43].mxu0 }
 0x340   : > { %2599 = vst [vmem:[%s4528_s9 + $0x270] sm:$0xff] %v2272_v41  ;;  %2539 = vst [vmem:[%s4528_s9 + $0x90] sm:$0xff] %v1972_v45 }
 0x342   : > { %v3343_v46 = vpop.f32.mrb[60].mxu1  ;;  %v3253_v47 = vpop.f32.mrb[44].mxu0 }
 0x343   : > { %2602 = vst [vmem:[%s4528_s9 + $0x288] sm:$0xff] %v3343_v46  ;;  %v2282_v48 = vpop.f32.mrb[61].mxu1  ;;  %2542 = vst [vmem:[%s4528_s9 + $0xa8] sm:$0xff] %v3253_v47  ;;  %v1982_v49 = vpop.f32.mrb[45].mxu0 }
 0x344   : > { %2601 = vst [vmem:[%s4528_s9 + $0x280] sm:$0xff] %v2282_v48  ;;  %2541 = vst [vmem:[%s4528_s9 + $0xa0] sm:$0xff] %v1982_v49 }
 0x346   : > { %v3346_v50 = vpop.f32.mrb[62].mxu1  ;;  %v3256_v51 = vpop.f32.mrb[46].mxu0 }
 0x347   : > { %2604 = vst [vmem:[%s4528_s9 + $0x298] sm:$0xff] %v3346_v50  ;;  %v2292_v52 = vpop.f32.mrb[63].mxu1  ;;  %2544 = vst [vmem:[%s4528_s9 + $0xb8] sm:$0xff] %v3256_v51  ;;  %v1992_v53 = vpop.f32.mrb[47].mxu0 }
 0x348   : > { %2603 = vst [vmem:[%s4528_s9 + $0x290] sm:$0xff] %v2292_v52  ;;  %2543 = vst [vmem:[%s4528_s9 + $0xb0] sm:$0xff] %v1992_v53 }
 0x34a   : > { %v3349_v54 = vpop.f32.mrb[64].mxu1  ;;  %v3259_v55 = vpop.f32.mrb[48].mxu0 }
 0x34b   : > { %2606 = vst [vmem:[%s4528_s9 + $0x2a8] sm:$0xff] %v3349_v54  ;;  %v2302_v56 = vpop.f32.mrb[65].mxu1  ;;  %2546 = vst [vmem:[%s4528_s9 + $0xc8] sm:$0xff] %v3259_v55  ;;  %v2002_v57 = vpop.f32.mrb[49].mxu0 }
 0x34c   : > { %2605 = vst [vmem:[%s4528_s9 + $0x2a0] sm:$0xff] %v2302_v56  ;;  %2545 = vst [vmem:[%s4528_s9 + $0xc0] sm:$0xff] %v2002_v57 }
 0x34e   : > { %v3352_v58 = vpop.f32.mrb[66].mxu1  ;;  %v3262_v59 = vpop.f32.mrb[50].mxu0 }
 0x34f   : > { %2608 = vst [vmem:[%s4528_s9 + $0x2b8] sm:$0xff] %v3352_v58  ;;  %v2312_v60 = vpop.f32.mrb[67].mxu1  ;;  %2548 = vst [vmem:[%s4528_s9 + $0xd8] sm:$0xff] %v3262_v59  ;;  %v2012_v61 = vpop.f32.mrb[51].mxu0 }
 0x350   : > { %2607 = vst [vmem:[%s4528_s9 + $0x2b0] sm:$0xff] %v2312_v60  ;;  %2547 = vst [vmem:[%s4528_s9 + $0xd0] sm:$0xff] %v2012_v61 }
 0x352   : > { %v3355_v62 = vpop.f32.mrb[68].mxu1  ;;  %v3265_v63 = vpop.f32.mrb[52].mxu0 }
 0x353   : > { %2610 = vst [vmem:[%s4528_s9 + $0x2c8] sm:$0xff] %v3355_v62  ;;  %v2322_v0 = vpop.f32.mrb[69].mxu1  ;;  %2550 = vst [vmem:[%s4528_s9 + $0xe8] sm:$0xff] %v3265_v63  ;;  %v2022_v1 = vpop.f32.mrb[53].mxu0 }
 0x354   : > { %2609 = vst [vmem:[%s4528_s9 + $0x2c0] sm:$0xff] %v2322_v0  ;;  %2549 = vst [vmem:[%s4528_s9 + $0xe0] sm:$0xff] %v2022_v1 }
 0x356   : > { %v3358_v2 = vpop.f32.mrb[70].mxu1  ;;  %v3268_v3 = vpop.f32.mrb[54].mxu0 }
 0x357   : > { %2612 = vst [vmem:[%s4528_s9 + $0x2d8] sm:$0xff] %v3358_v2  ;;  %v2332_v4 = vpop.f32.mrb[71].mxu1  ;;  %2552 = vst [vmem:[%s4528_s9 + $0xf8] sm:$0xff] %v3268_v3  ;;  %v2032_v5 = vpop.f32.mrb[55].mxu0 }
 0x358   : > { %2611 = vst [vmem:[%s4528_s9 + $0x2d0] sm:$0xff] %v2332_v4  ;;  %2551 = vst [vmem:[%s4528_s9 + $0xf0] sm:$0xff] %v2032_v5 }
 0x35a   : > { %v3361_v6 = vpop.f32.mrb[72].mxu1  ;;  %v3271_v7 = vpop.f32.mrb[56].mxu0 }
 0x35b   : > { %2614 = vst [vmem:[%s4528_s9 + $0x2e8] sm:$0xff] %v3361_v6  ;;  %v2342_v8 = vpop.f32.mrb[73].mxu1  ;;  %2554 = vst [vmem:[%s4528_s9 + $0x108] sm:$0xff] %v3271_v7  ;;  %v2042_v9 = vpop.f32.mrb[57].mxu0 }
 0x35c   : > { %2613 = vst [vmem:[%s4528_s9 + $0x2e0] sm:$0xff] %v2342_v8  ;;  %2553 = vst [vmem:[%s4528_s9 + $0x100] sm:$0xff] %v2042_v9 }
 0x35e   : > { %v3364_v10 = vpop.f32.mrb[74].mxu1  ;;  %v3274_v11 = vpop.f32.mrb[58].mxu0 }
 0x35f   : > { %2616 = vst [vmem:[%s4528_s9 + $0x2f8] sm:$0xff] %v3364_v10  ;;  %v2352_v12 = vpop.f32.mrb[75].mxu1  ;;  %2556 = vst [vmem:[%s4528_s9 + $0x118] sm:$0xff] %v3274_v11  ;;  %v2052_v13 = vpop.f32.mrb[59].mxu0 }
 0x360   : > { %2615 = vst [vmem:[%s4528_s9 + $0x2f0] sm:$0xff] %v2352_v12  ;;  %2555 = vst [vmem:[%s4528_s9 + $0x110] sm:$0xff] %v2052_v13 }
 0x362   : > { %v3367_v14 = vpop.f32.mrb[76].mxu1  ;;  %v3277_v15 = vpop.f32.mrb[60].mxu0 }
 0x363   : > { %2618 = vst [vmem:[%s4528_s9 + $0x308] sm:$0xff] %v3367_v14  ;;  %v2362_v16 = vpop.f32.mrb[77].mxu1  ;;  %2558 = vst [vmem:[%s4528_s9 + $0x128] sm:$0xff] %v3277_v15  ;;  %v2062_v17 = vpop.f32.mrb[61].mxu0 }
 0x364   : > { %2617 = vst [vmem:[%s4528_s9 + $0x300] sm:$0xff] %v2362_v16  ;;  %2557 = vst [vmem:[%s4528_s9 + $0x120] sm:$0xff] %v2062_v17 }
 0x366   : > { %v3370_v18 = vpop.f32.mrb[78].mxu1  ;;  %v3280_v19 = vpop.f32.mrb[62].mxu0 }
 0x367   : > { %2620 = vst [vmem:[%s4528_s9 + $0x318] sm:$0xff] %v3370_v18  ;;  %v2372_v20 = vpop.f32.mrb[79].mxu1  ;;  %2560 = vst [vmem:[%s4528_s9 + $0x138] sm:$0xff] %v3280_v19  ;;  %v2072_v21 = vpop.f32.mrb[63].mxu0 }
 0x368   : > { %2619 = vst [vmem:[%s4528_s9 + $0x310] sm:$0xff] %v2372_v20  ;;  %2559 = vst [vmem:[%s4528_s9 + $0x130] sm:$0xff] %v2072_v21 }
 0x36a   : > { %v3373_v22 = vpop.f32.mrb[80].mxu1  ;;  %v3283_v23 = vpop.f32.mrb[64].mxu0 }
 0x36b   : > { %2622 = vst [vmem:[%s4528_s9 + $0x328] sm:$0xff] %v3373_v22  ;;  %v2382_v24 = vpop.f32.mrb[81].mxu1  ;;  %2562 = vst [vmem:[%s4528_s9 + $0x148] sm:$0xff] %v3283_v23  ;;  %v2082_v25 = vpop.f32.mrb[65].mxu0 }
 0x36c   : > { %2621 = vst [vmem:[%s4528_s9 + $0x320] sm:$0xff] %v2382_v24  ;;  %2561 = vst [vmem:[%s4528_s9 + $0x140] sm:$0xff] %v2082_v25 }
 0x36e   : > { %v3376_v26 = vpop.f32.mrb[82].mxu1  ;;  %v3286_v27 = vpop.f32.mrb[66].mxu0 }
 0x36f   : > { %2624 = vst [vmem:[%s4528_s9 + $0x338] sm:$0xff] %v3376_v26  ;;  %v2392_v28 = vpop.f32.mrb[83].mxu1  ;;  %2564 = vst [vmem:[%s4528_s9 + $0x158] sm:$0xff] %v3286_v27  ;;  %v2092_v29 = vpop.f32.mrb[67].mxu0 }
 0x370   : > { %2623 = vst [vmem:[%s4528_s9 + $0x330] sm:$0xff] %v2392_v28  ;;  %2563 = vst [vmem:[%s4528_s9 + $0x150] sm:$0xff] %v2092_v29 }
 0x372   : > { %v3379_v30 = vpop.f32.mrb[84].mxu1  ;;  %v3289_v31 = vpop.f32.mrb[68].mxu0 }
 0x373   : > { %2626 = vst [vmem:[%s4528_s9 + $0x348] sm:$0xff] %v3379_v30  ;;  %v2402_v32 = vpop.f32.mrb[85].mxu1  ;;  %2566 = vst [vmem:[%s4528_s9 + $0x168] sm:$0xff] %v3289_v31  ;;  %v2102_v33 = vpop.f32.mrb[69].mxu0 }
 0x374   : > { %2625 = vst [vmem:[%s4528_s9 + $0x340] sm:$0xff] %v2402_v32  ;;  %2565 = vst [vmem:[%s4528_s9 + $0x160] sm:$0xff] %v2102_v33 }
 0x376   : > { %v3382_v34 = vpop.f32.mrb[86].mxu1  ;;  %v3292_v35 = vpop.f32.mrb[70].mxu0 }
 0x377   : > { %2628 = vst [vmem:[%s4528_s9 + $0x358] sm:$0xff] %v3382_v34  ;;  %v2412_v36 = vpop.f32.mrb[87].mxu1  ;;  %2568 = vst [vmem:[%s4528_s9 + $0x178] sm:$0xff] %v3292_v35  ;;  %v2112_v38 = vpop.f32.mrb[71].mxu0 }
 0x378   : > { %2627 = vst [vmem:[%s4528_s9 + $0x350] sm:$0xff] %v2412_v36  ;;  %2567 = vst [vmem:[%s4528_s9 + $0x170] sm:$0xff] %v2112_v38 }
 0x37a   : > { %v3385_v39 = vpop.f32.mrb[88].mxu1  ;;  %v3295_v40 = vpop.f32.mrb[72].mxu0 }
 0x37b   : > { %2630 = vst [vmem:[%s4528_s9 + $0x368] sm:$0xff] %v3385_v39  ;;  %v2422_v42 = vpop.f32.mrb[89].mxu1  ;;  %2570 = vst [vmem:[%s4528_s9 + $0x188] sm:$0xff] %v3295_v40  ;;  %v2122_v43 = vpop.f32.mrb[73].mxu0 }
 0x37c   : > { %2629 = vst [vmem:[%s4528_s9 + $0x360] sm:$0xff] %v2422_v42  ;;  %2569 = vst [vmem:[%s4528_s9 + $0x180] sm:$0xff] %v2122_v43 }
 0x37e   : > { %v3388_v37 = vpop.f32.mrb[90].mxu1  ;;  %v3298_v44 = vpop.f32.mrb[74].mxu0 }
 0x37f   : > { %2632 = vst [vmem:[%s4528_s9 + $0x378] sm:$0xff] %v3388_v37  ;;  %v2432_v41 = vpop.f32.mrb[91].mxu1  ;;  %2572 = vst [vmem:[%s4528_s9 + $0x198] sm:$0xff] %v3298_v44  ;;  %v2132_v45 = vpop.f32.mrb[75].mxu0 }
 0x380   : > { %2631 = vst [vmem:[%s4528_s9 + $0x370] sm:$0xff] %v2432_v41  ;;  %2571 = vst [vmem:[%s4528_s9 + $0x190] sm:$0xff] %v2132_v45 }
 0x382   : > { %v3391_v46 = vpop.f32.mrb[92].mxu1  ;;  %v3301_v47 = vpop.f32.mrb[76].mxu0 }
 0x383   : > { %2634 = vst [vmem:[%s4528_s9 + $0x388] sm:$0xff] %v3391_v46  ;;  %v2442_v48 = vpop.f32.mrb[93].mxu1  ;;  %2574 = vst [vmem:[%s4528_s9 + $0x1a8] sm:$0xff] %v3301_v47  ;;  %v2142_v49 = vpop.f32.mrb[77].mxu0 }
 0x384   : > { %2633 = vst [vmem:[%s4528_s9 + $0x380] sm:$0xff] %v2442_v48  ;;  %2573 = vst [vmem:[%s4528_s9 + $0x1a0] sm:$0xff] %v2142_v49 }
 0x386   : > { %v3394_v50 = vpop.f32.mrb[94].mxu1  ;;  %v3304_v51 = vpop.f32.mrb[78].mxu0 }
 0x387   : > { %2636 = vst [vmem:[%s4528_s9 + $0x398] sm:$0xff] %v3394_v50  ;;  %v2452_v52 = vpop.f32.mrb[95].mxu1  ;;  %2576 = vst [vmem:[%s4528_s9 + $0x1b8] sm:$0xff] %v3304_v51  ;;  %v2152_v53 = vpop.f32.mrb[79].mxu0 }
 0x388   : > { %2635 = vst [vmem:[%s4528_s9 + $0x390] sm:$0xff] %v2452_v52  ;;  %2575 = vst [vmem:[%s4528_s9 + $0x1b0] sm:$0xff] %v2152_v53 }
 0x38a   : > { %v3397_v54 = vpop.f32.mrb[96].mxu1  ;;  %v3307_v55 = vpop.f32.mrb[80].mxu0 }
 0x38b   : > { %2638 = vst [vmem:[%s4528_s9 + $0x3a8] sm:$0xff] %v3397_v54  ;;  %v2462_v56 = vpop.f32.mrb[97].mxu1  ;;  %2578 = vst [vmem:[%s4528_s9 + $0x1c8] sm:$0xff] %v3307_v55  ;;  %v2162_v57 = vpop.f32.mrb[81].mxu0 }
 0x38c   : > { %2637 = vst [vmem:[%s4528_s9 + $0x3a0] sm:$0xff] %v2462_v56  ;;  %2577 = vst [vmem:[%s4528_s9 + $0x1c0] sm:$0xff] %v2162_v57 }
 0x38e   : > { %v3400_v58 = vpop.f32.mrb[98].mxu1  ;;  %v3310_v59 = vpop.f32.mrb[82].mxu0 }
 0x38f   : > { %2640 = vst [vmem:[%s4528_s9 + $0x3b8] sm:$0xff] %v3400_v58  ;;  %v2472_v60 = vpop.f32.mrb[99].mxu1  ;;  %2580 = vst [vmem:[%s4528_s9 + $0x1d8] sm:$0xff] %v3310_v59  ;;  %v2172_v61 = vpop.f32.mrb[83].mxu0 }
 0x390   : > { %2639 = vst [vmem:[%s4528_s9 + $0x3b0] sm:$0xff] %v2472_v60  ;;  %2579 = vst [vmem:[%s4528_s9 + $0x1d0] sm:$0xff] %v2172_v61 }
 0x392   : > { %v3403_v62 = vpop.f32.mrb[100].mxu1 }
 0x393   : > { %2642 = vst [vmem:[%s4528_s9 + $0x3c8] sm:$0xff] %v3403_v62  ;;  %v2482_v63 = vpop.f32.mrb[101].mxu1 }
 0x394   : > { %2641 = vst [vmem:[%s4528_s9 + $0x3c0] sm:$0xff] %v2482_v63 }
 0x396   : > { %v3406_v0 = vpop.f32.mrb[102].mxu1 }
 0x397   : > { %2644 = vst [vmem:[%s4528_s9 + $0x3d8] sm:$0xff] %v3406_v0  ;;  %v2492_v1 = vpop.f32.mrb[103].mxu1 }
 0x398   : > { %2643 = vst [vmem:[%s4528_s9 + $0x3d0] sm:$0xff] %v2492_v1 }
 0x39a   : > { %v3409_v2 = vpop.f32.mrb[104].mxu1 }
 0x39b   : > { %2646 = vst [vmem:[%s4528_s9 + $0x3e8] sm:$0xff] %v3409_v2  ;;  %v2502_v3 = vpop.f32.mrb[105].mxu1 }
 0x39c   : > { %2645 = vst [vmem:[%s4528_s9 + $0x3e0] sm:$0xff] %v2502_v3 }
 0x39e   : > { %v3412_v4 = vpop.f32.mrb[106].mxu1 }
 0x39f   : > { %2648 = vst [vmem:[%s4528_s9 + $0x3f8] sm:$0xff] %v3412_v4  ;;  %v2512_v5 = vpop.f32.mrb[107].mxu1 }
 0x3a0   : > { %2647 = vst [vmem:[%s4528_s9 + $0x3f0] sm:$0xff] %v2512_v5 }
 0x3a1   : > { %3628 = shalt.err (!%p3625_p3)
}
 0x3a2   : > { %s3629_s26 = scalar_lea.hbm %s4661_s14, 16384  ;;  %s3633_s13 = scalar_lea.hbm %s4716_s6, 32768 }
 0x3a3   : > { %p3630_p4 = scmp.ne.s32.totalorder %s4661_s14, %s3629_s26  ;;  %p3634_p9 = scmp.lt.u32.totalorder %s4661_s14, %s4716_s6 }
 0x3a4   : > { %p3635_p10 = scmp.lt.u32.totalorder %s3633_s13, %s3629_s26  ;;  %p3637_p12 = scmp.lt.u32.totalorder %s3629_s26, %s4661_s14 }
 0x3a5   : > { %p3631_p7 = pnand %p3630_p4, %p3756_p5 }
 0x3a6   : > { %p3636_p11 = por %p3635_p10, %p3634_p9 }
 0x3a7   : > { %p3632_p8 = pneg %p3631_p7 }
 0x3a8   : > { %p3638_p13 = por %p3637_p12, %p3636_p11 }
 0x3aa   : > { %p3639_p0 = pnand %p3638_p13, %p3632_p8 }
 0x3ac   : > { %3642 = shalt.err (!%p3639_p0)
}
 0x3ad   : > { %s3681_s10 = smov 128   ;;  %s3682_s12 = smov 8  }
 0x3ae   : > { %3472 = dma.vmem_to_hbm [thread:$0]  (%p3756_p5), %s4663_s11, 16384, %s4661_s14, %s4669_s25, %s3681_s10, %s3681_s10, %s3682_s12  }
 0x3af PF: > { %p3478_p1 = scmp.ge.s32.totalorder %s3677_s24, 2  ;;  %s2678_s16 = sand.u32 1, %s3665_s21  }
 0x3b0   : > { %s2679_s15 = scalar_lea.sflag [#allocation3], %s2678_s16 }
 0x3b1   : > { %p3475_p2 = pnand %p3478_p1, %p3760_p6 }
 0x3b3   : > { %3660 = dma.done.wait (!%p3475_p2), %s2679_s15, 16384  }
 0x3b4   : > { %3662 = vsyncadd (!%p3475_p2), %s2679_s15, 4294950912  ;;  %p16_p3 = scmp.ge.s32.totalorder %s3743_s27, 4   ;;  %s4719_s21 = smov %s3669_s22 }
 0x3b5   : > { %s4720_s22 = smov %s3673_s23  ;;  %s4721_s23 = smov %s3754_s30 }
 0x3b6   : > { %s4722_s24 = smov %s3743_s27  ;;  %18 = sbr.rel (!%p16_p3) target bundleno = 3 (0x3), region = 79 }
 0x3bd   :  { %2684 = vsyncpa [#allocation3], 1 }
 0x3be   :  { %2686 = vsyncpa [#allocation3 + $0x1], 1 }

</bundles_post_ra>
